<compile_context>
chip_gen: v6e
topology: v6e:2x2x1
jax: 0.10.0
libtpu: 0.0.40
codegen_flags: <defaults>
</compile_context>

<pallas_src>
import math
import jax
import jax.numpy as jnp
from jax import lax
from jax.experimental import pallas as pl
from jax.experimental.pallas import tpu as pltpu  # noqa: F401  (kept for TPU-targeted builds)

# ---- hyperparameters (small, consistent with the module's __init__) ----
BATCH      = 2
SEQ        = 8
D_MODEL    = 32
N_HEAD     = 4
FFN_HIDDEN = 64
N_LAYERS   = 2
ENC_VOC    = 50
DEC_VOC    = 48
MAX_LEN    = 16
SRC_PAD    = 0
EPS        = 1e-12                 # hyunwoongko-style LayerNorm eps

D_HEAD = D_MODEL // N_HEAD
BS     = BATCH * SEQ               # flattened rows
VPAD   = 128                       # lane-dense padded vocab for the decoder head
SCALE  = 1.0 / math.sqrt(D_HEAD)
NEG_PAD = -10000.0                 # reference masked_fill value (own-batch pads)
NEG_XB  = -1e30                    # cross-batch block; exp underflows to exactly 0


def _layernorm(x, gamma, beta):
    mean = jnp.mean(x, axis=-1, keepdims=True)
    var = jnp.mean((x - mean) ** 2, axis=-1, keepdims=True)
    return gamma * (x - mean) * lax.rsqrt(var + EPS) + beta


def fused_transformer_kernel(x_ref, keep_ref, nbias_ref,
                             wqkv_ref, wo_ref, wf1_ref, wf2_ref, sp_ref,
                             decw_ref, decb_ref, o_ref):
    D, F, H, dh = D_MODEL, FFN_HIDDEN, N_HEAD, D_HEAD

    x = x_ref[...]           # [BS, D]
    keep = keep_ref[...]     # [BS, BS]  1.0 = keep score, 0.0 = replace
    nbias = nbias_ref[...]   # [BS, BS]  0.0 / -10000 / -1e30

    for li in range(N_LAYERS):                      # static: fully unrolled
        sp = sp_ref[li]                             # [8, 128] packed small params
        bqkv = sp[0:1, 0:3 * D]                     # [1, 3D]
        bo   = sp[1:2, 0:D]
        g1   = sp[2:3, 0:D]
        be1  = sp[3:4, 0:D]
        bf1  = sp[4:5, 0:F]
        bf2  = sp[5:6, 0:D]
        g2   = sp[6:7, 0:D]
        be2  = sp[7:8, 0:D]

        # ---- fused Q/K/V projection: one MXU pass, 96-lane output ----
        qkv = jnp.dot(x, wqkv_ref[li], preferred_element_type=jnp.float32) + bqkv
        wo = wo_ref[li]                             # [D, D]

        # ---- multi-head self-attention on the flattened batch ----
        attn = jnp.zeros((BS, D), jnp.float32)
        for h in range(H):                          # static, H = 4
            c = h * dh
            qh = qkv[:, c:c + dh]                   # [BS, dh]
            kh = qkv[:, D + c:D + c + dh]           # [BS, dh]
            vh = qkv[:, 2 * D + c:2 * D + c + dh]   # [BS, dh]

            # q @ k^T folded into dot_general (no explicit transpose)
            s = lax.dot_general(qh, kh, (((1,), (1,)), ((), ())),
                                preferred_element_type=jnp.float32) * SCALE
            # masked_fill semantics with the compare hoisted into the wrapper:
            #   kept -> s, own-batch pad -> -10000 exactly, cross-batch -> -1e30
            s = s * keep + nbias
            s = s - jnp.max(s, axis=-1, keepdims=True)
            p = jnp.exp(s)
            p = p * pl.reciprocal(jnp.sum(p, axis=-1, keepdims=True), approx=True)

            ctx = jnp.dot(p, vh, preferred_element_type=jnp.float32)       # [BS, dh]
            # accumulate through the matching slice of w_concat: no head concat
            attn = attn + jnp.dot(ctx, wo[c:c + dh, :],
                                  preferred_element_type=jnp.float32)      # [BS, D]
        attn = attn + bo

        # ---- add & norm 1 (dropout is identity at inference) ----
        x1 = _layernorm(attn + x, g1, be1)

        # ---- position-wise FFN (ReLU) ----
        hdn = jnp.dot(x1, wf1_ref[li], preferred_element_type=jnp.float32) + bf1
        hdn = jnp.maximum(hdn, 0.0)
        ff = jnp.dot(hdn, wf2_ref[li], preferred_element_type=jnp.float32) + bf2

        # ---- add & norm 2 ----
        x = _layernorm(ff + x1, g2, be2)

    # ---- decoder head, lane-dense [BS, 128] output (sliced to DEC_VOC outside) ----
    o_ref[...] = (jnp.dot(x, decw_ref[...], preferred_element_type=jnp.float32)
                  + decb_ref[...])


def run_fused_transformer(x_flat, keep, nbias, params):
    # Single gridless call: every operand is placed whole in VMEM and the kernel
    # body runs exactly once.  (On v7x this uses one of the two TensorCores; at
    # this size the per-call overhead dominates, so fusion wins anyway.)
    return pl.pallas_call(
        fused_transformer_kernel,
        out_shape=jax.ShapeDtypeStruct((BS, VPAD), jnp.float32),
    )(x_flat, keep, nbias,
      params["wqkv"], params["wo"], params["wf1"], params["wf2"], params["sp"],
      params["dec_w_pad"], params["dec_b_pad"])


# ---------------- parameter init (deterministic, synthetic) ----------------
def init_params(key):
    def nrm(k, shape, scale=0.02):
        return scale * jax.random.normal(k, shape, dtype=jnp.float32)

    keys = jax.random.split(key, 4 + N_LAYERS)
    D, F = D_MODEL, FFN_HIDDEN
    params = {}

    tok = nrm(keys[0], (ENC_VOC, D), 1.0)
    tok = tok.at[SRC_PAD].set(0.0)                      # padding_idx row is zero
    params["tok_emb"] = tok
    params["pos_emb"] = nrm(keys[1], (MAX_LEN, D), 1.0)  # learnable_pos_emb=True

    # decoder head, zero-padded to a lane-dense 128-wide output slab
    dec_w = nrm(keys[2], (D, DEC_VOC))
    params["dec_w_pad"] = jnp.zeros((D, VPAD), jnp.float32).at[:, :DEC_VOC].set(dec_w)
    params["dec_b_pad"] = jnp.zeros((1, VPAD), jnp.float32)   # bias is zero

    wqkv_l, wo_l, wf1_l, wf2_l, sp_l = [], [], [], [], []
    for li in range(N_LAYERS):
        lk = jax.random.split(keys[4 + li], 8)
        wq, wk, wv = nrm(lk[0], (D, D)), nrm(lk[1], (D, D)), nrm(lk[2], (D, D))
        wqkv_l.append(jnp.concatenate([wq, wk, wv], axis=1))   # fused [D, 3D]
        wo_l.append(nrm(lk[3], (D, D)))
        wf1_l.append(nrm(lk[4], (D, F)))
        wf2_l.append(nrm(lk[5], (F, D)))

        # packed small params, one [8, 128] block per layer:
        # row0: bq|bk|bv  row1: bo  row2: g1  row3: be1
        # row4: bf1       row5: bf2 row6: g2  row7: be2
        sp = jnp.zeros((8, 128), jnp.float32)
        sp = sp.at[2, :D].set(1.0)      # LN1 gamma = ones
        sp = sp.at[6, :D].set(1.0)      # LN2 gamma = ones
        # all biases / betas are zero (matches the synthetic init used previously)
        sp_l.append(sp)

    params["wqkv"] = jnp.stack(wqkv_l)
    params["wo"]   = jnp.stack(wo_l)
    params["wf1"]  = jnp.stack(wf1_l)
    params["wf2"]  = jnp.stack(wf2_l)
    params["sp"]   = jnp.stack(sp_l)
    return params


# ---------------- glue (plain JAX) ----------------
def make_attn_masks(src, pad_idx):
    """Block-diagonal flattened masks reproducing Transformer.make_pad_mask.

    keep  [BS,BS]: 1.0 where the reference keeps the score (same batch, q and k
                   both non-pad), else 0.0.
    nbias [BS,BS]: 0.0 where kept, -10000.0 for same-batch pad pairs (exact
                   masked_fill value), -1e30 for cross-batch pairs so they
                   vanish exactly after softmax.
    """
    ne = (src != pad_idx).astype(jnp.float32)                      # [B, S]
    keep_b = ne[:, :, None] * ne[:, None, :]                       # [B, S, S]
    eye = jnp.eye(BATCH, dtype=jnp.float32)                        # [B, B]
    keep = (eye[:, None, :, None] * keep_b[:, :, None, :]).reshape(BS, BS)
    same_batch = (eye[:, None, :, None]
                  * jnp.ones((1, SEQ, 1, SEQ), jnp.float32)).reshape(BS, BS)
    nbias = jnp.where(keep > 0, 0.0,
                      jnp.where(same_batch > 0, NEG_PAD, NEG_XB)).astype(jnp.float32)
    return keep, nbias


def transformer_forward(src, params):
    B, S = src.shape
    keep, nbias = make_attn_masks(src, SRC_PAD)
    # embedding glue (gather) stays in plain JAX
    x = params["tok_emb"][src] + params["pos_emb"][:S][None, :, :]   # [B, S, D]
    # TODO(synk): dropout after embedding / inside layers omitted (inference semantics)
    x_flat = x.reshape(BS, D_MODEL)
    out_flat = run_fused_transformer(x_flat, keep, nbias, params)    # [BS, 128]
    return out_flat.reshape(B, S, VPAD)[:, :, :DEC_VOC]              # [B, S, DEC_VOC]


if __name__ == "__main__":
    key = jax.random.PRNGKey(0)
    pkey, dkey = jax.random.split(key)
    params = init_params(pkey)

    src = jax.random.randint(dkey, (BATCH, SEQ), 0, ENC_VOC, dtype=jnp.int32)
    src = src.at[:, -2:].set(SRC_PAD)   # make some positions padding so the mask matters

    out = transformer_forward(src, params)
    jax.block_until_ready(out)
    assert out.shape == (BATCH, SEQ, DEC_VOC) and out.dtype == jnp.float32
    assert bool(jnp.all(jnp.isfinite(out)))
    print("KERNEL_OK")
</pallas_src>

<mosaic_0001>
module attributes {stable_mosaic.version = 11 : i64} {
  func.func @fused_transformer_kernel(%arg0: memref<16x32xf32, #tpu.memory_space<vmem>>, %arg1: memref<16x16xf32, #tpu.memory_space<vmem>>, %arg2: memref<16x16xf32, #tpu.memory_space<vmem>>, %arg3: memref<2x32x96xf32, #tpu.memory_space<vmem>>, %arg4: memref<2x32x32xf32, #tpu.memory_space<vmem>>, %arg5: memref<2x32x64xf32, #tpu.memory_space<vmem>>, %arg6: memref<2x64x32xf32, #tpu.memory_space<vmem>>, %arg7: memref<2x8x128xf32, #tpu.memory_space<vmem>>, %arg8: memref<32x128xf32, #tpu.memory_space<vmem>>, %arg9: memref<1x128xf32, #tpu.memory_space<vmem>>, %arg10: memref<16x128xf32, #tpu.memory_space<vmem>>) attributes {dimension_semantics = [], scalar_prefetch = 0 : i64, scratch_operands = 0 : i64, tpu.core_type = #tpu.core_type<tc>} {
    %c0 = arith.constant 0 : index
    %c0_0 = arith.constant 0 : index
    %0 = vector.load %arg0[%c0, %c0_0] : memref<16x32xf32, #tpu.memory_space<vmem>>, vector<16x32xf32>
    %c0_1 = arith.constant 0 : index
    %c0_2 = arith.constant 0 : index
    %1 = vector.load %arg1[%c0_1, %c0_2] : memref<16x16xf32, #tpu.memory_space<vmem>>, vector<16x16xf32>
    %c0_3 = arith.constant 0 : index
    %c0_4 = arith.constant 0 : index
    %2 = vector.load %arg2[%c0_3, %c0_4] : memref<16x16xf32, #tpu.memory_space<vmem>>, vector<16x16xf32>
    %c0_5 = arith.constant 0 : index
    %c0_6 = arith.constant 0 : index
    %c0_7 = arith.constant 0 : index
    %3 = vector.load %arg7[%c0_5, %c0_6, %c0_7] : memref<2x8x128xf32, #tpu.memory_space<vmem>>, vector<1x8x128xf32>
    %4 = vector.shape_cast %3 : vector<1x8x128xf32> to vector<8x128xf32>
    %5 = vector.extract_strided_slice %4 {offsets = [0, 0], sizes = [1, 96], strides = [1, 1]} : vector<8x128xf32> to vector<1x96xf32>
    %6 = vector.extract_strided_slice %4 {offsets = [1, 0], sizes = [1, 32], strides = [1, 1]} : vector<8x128xf32> to vector<1x32xf32>
    %7 = vector.extract_strided_slice %4 {offsets = [2, 0], sizes = [1, 32], strides = [1, 1]} : vector<8x128xf32> to vector<1x32xf32>
    %8 = vector.extract_strided_slice %4 {offsets = [3, 0], sizes = [1, 32], strides = [1, 1]} : vector<8x128xf32> to vector<1x32xf32>
    %9 = vector.extract_strided_slice %4 {offsets = [4, 0], sizes = [1, 64], strides = [1, 1]} : vector<8x128xf32> to vector<1x64xf32>
    %10 = vector.extract_strided_slice %4 {offsets = [5, 0], sizes = [1, 32], strides = [1, 1]} : vector<8x128xf32> to vector<1x32xf32>
    %11 = vector.extract_strided_slice %4 {offsets = [6, 0], sizes = [1, 32], strides = [1, 1]} : vector<8x128xf32> to vector<1x32xf32>
    %12 = vector.extract_strided_slice %4 {offsets = [7, 0], sizes = [1, 32], strides = [1, 1]} : vector<8x128xf32> to vector<1x32xf32>
    %c0_8 = arith.constant 0 : index
    %c0_9 = arith.constant 0 : index
    %c0_10 = arith.constant 0 : index
    %13 = vector.load %arg3[%c0_8, %c0_9, %c0_10] : memref<2x32x96xf32, #tpu.memory_space<vmem>>, vector<1x32x96xf32>
    %14 = vector.shape_cast %13 : vector<1x32x96xf32> to vector<32x96xf32>
    %cst = arith.constant dense<0.000000e+00> : vector<16x96xf32>
    %15 = tpu.matmul %0, %14, %cst {dimension_numbers = #tpu.dot_dimension_numbers<[1], [0], [0], [1], [0, 0, 1, 1], [], []>} : vector<16x32xf32>, vector<32x96xf32>, vector<16x96xf32> -> vector<16x96xf32>
    %16 = vector.broadcast %5 : vector<1x96xf32> to vector<16x96xf32>
    %17 = arith.addf %15, %16 : vector<16x96xf32>
    %c0_11 = arith.constant 0 : index
    %c0_12 = arith.constant 0 : index
    %c0_13 = arith.constant 0 : index
    %18 = vector.load %arg4[%c0_11, %c0_12, %c0_13] : memref<2x32x32xf32, #tpu.memory_space<vmem>>, vector<1x32x32xf32>
    %19 = vector.shape_cast %18 : vector<1x32x32xf32> to vector<32x32xf32>
    %cst_14 = arith.constant 0.000000e+00 : f32
    %20 = vector.broadcast %cst_14 : f32 to vector<16x32xf32>
    %21 = vector.extract_strided_slice %17 {offsets = [0, 0], sizes = [16, 8], strides = [1, 1]} : vector<16x96xf32> to vector<16x8xf32>
    %22 = vector.extract_strided_slice %17 {offsets = [0, 32], sizes = [16, 8], strides = [1, 1]} : vector<16x96xf32> to vector<16x8xf32>
    %23 = vector.extract_strided_slice %17 {offsets = [0, 64], sizes = [16, 8], strides = [1, 1]} : vector<16x96xf32> to vector<16x8xf32>
    %cst_15 = arith.constant dense<0.000000e+00> : vector<16x16xf32>
    %24 = tpu.matmul %21, %22, %cst_15 {dimension_numbers = #tpu.dot_dimension_numbers<[1], [1], [0], [0], [0, 0, 1, 0], [], []>} : vector<16x8xf32>, vector<16x8xf32>, vector<16x16xf32> -> vector<16x16xf32>
    %cst_16 = arith.constant 0.353553385 : f32
    %25 = vector.broadcast %cst_16 : f32 to vector<16x16xf32>
    %26 = arith.mulf %24, %25 : vector<16x16xf32>
    %27 = arith.mulf %26, %1 : vector<16x16xf32>
    %28 = arith.addf %27, %2 : vector<16x16xf32>
    %cst_17 = arith.constant dense<0xFF800000> : vector<16xf32>
    %29 = vector.multi_reduction <maximumf>, %28, %cst_17 [1] : vector<16x16xf32> to vector<16xf32>
    %30 = vector.shape_cast %29 : vector<16xf32> to vector<16x1xf32>
    %31 = vector.broadcast %30 : vector<16x1xf32> to vector<16x16xf32>
    %32 = arith.subf %28, %31 : vector<16x16xf32>
    %33 = math.exp %32 : vector<16x16xf32>
    %cst_18 = arith.constant dense<0.000000e+00> : vector<16xf32>
    %34 = vector.multi_reduction <add>, %33, %cst_18 [1] : vector<16x16xf32> to vector<16xf32>
    %35 = vector.shape_cast %34 : vector<16xf32> to vector<16x1xf32>
    %36 = tpu.reciprocal %35 {approx = true} : vector<16x1xf32> -> vector<16x1xf32>
    %37 = vector.broadcast %36 : vector<16x1xf32> to vector<16x16xf32>
    %38 = arith.mulf %33, %37 : vector<16x16xf32>
    %cst_19 = arith.constant dense<0.000000e+00> : vector<16x8xf32>
    %39 = tpu.matmul %38, %23, %cst_19 {dimension_numbers = #tpu.dot_dimension_numbers<[1], [0], [0], [1], [0, 0, 1, 1], [], []>} : vector<16x16xf32>, vector<16x8xf32>, vector<16x8xf32> -> vector<16x8xf32>
    %40 = vector.extract_strided_slice %19 {offsets = [0, 0], sizes = [8, 32], strides = [1, 1]} : vector<32x32xf32> to vector<8x32xf32>
    %cst_20 = arith.constant dense<0.000000e+00> : vector<16x32xf32>
    %41 = tpu.matmul %39, %40, %cst_20 {dimension_numbers = #tpu.dot_dimension_numbers<[1], [0], [0], [1], [0, 0, 1, 1], [], []>} : vector<16x8xf32>, vector<8x32xf32>, vector<16x32xf32> -> vector<16x32xf32>
    %42 = arith.addf %20, %41 : vector<16x32xf32>
    %43 = vector.extract_strided_slice %17 {offsets = [0, 8], sizes = [16, 8], strides = [1, 1]} : vector<16x96xf32> to vector<16x8xf32>
    %44 = vector.extract_strided_slice %17 {offsets = [0, 40], sizes = [16, 8], strides = [1, 1]} : vector<16x96xf32> to vector<16x8xf32>
    %45 = vector.extract_strided_slice %17 {offsets = [0, 72], sizes = [16, 8], strides = [1, 1]} : vector<16x96xf32> to vector<16x8xf32>
    %cst_21 = arith.constant dense<0.000000e+00> : vector<16x16xf32>
    %46 = tpu.matmul %43, %44, %cst_21 {dimension_numbers = #tpu.dot_dimension_numbers<[1], [1], [0], [0], [0, 0, 1, 0], [], []>} : vector<16x8xf32>, vector<16x8xf32>, vector<16x16xf32> -> vector<16x16xf32>
    %cst_22 = arith.constant 0.353553385 : f32
    %47 = vector.broadcast %cst_22 : f32 to vector<16x16xf32>
    %48 = arith.mulf %46, %47 : vector<16x16xf32>
    %49 = arith.mulf %48, %1 : vector<16x16xf32>
    %50 = arith.addf %49, %2 : vector<16x16xf32>
    %cst_23 = arith.constant dense<0xFF800000> : vector<16xf32>
    %51 = vector.multi_reduction <maximumf>, %50, %cst_23 [1] : vector<16x16xf32> to vector<16xf32>
    %52 = vector.shape_cast %51 : vector<16xf32> to vector<16x1xf32>
    %53 = vector.broadcast %52 : vector<16x1xf32> to vector<16x16xf32>
    %54 = arith.subf %50, %53 : vector<16x16xf32>
    %55 = math.exp %54 : vector<16x16xf32>
    %cst_24 = arith.constant dense<0.000000e+00> : vector<16xf32>
    %56 = vector.multi_reduction <add>, %55, %cst_24 [1] : vector<16x16xf32> to vector<16xf32>
    %57 = vector.shape_cast %56 : vector<16xf32> to vector<16x1xf32>
    %58 = tpu.reciprocal %57 {approx = true} : vector<16x1xf32> -> vector<16x1xf32>
    %59 = vector.broadcast %58 : vector<16x1xf32> to vector<16x16xf32>
    %60 = arith.mulf %55, %59 : vector<16x16xf32>
    %cst_25 = arith.constant dense<0.000000e+00> : vector<16x8xf32>
    %61 = tpu.matmul %60, %45, %cst_25 {dimension_numbers = #tpu.dot_dimension_numbers<[1], [0], [0], [1], [0, 0, 1, 1], [], []>} : vector<16x16xf32>, vector<16x8xf32>, vector<16x8xf32> -> vector<16x8xf32>
    %62 = vector.extract_strided_slice %19 {offsets = [8, 0], sizes = [8, 32], strides = [1, 1]} : vector<32x32xf32> to vector<8x32xf32>
    %cst_26 = arith.constant dense<0.000000e+00> : vector<16x32xf32>
    %63 = tpu.matmul %61, %62, %cst_26 {dimension_numbers = #tpu.dot_dimension_numbers<[1], [0], [0], [1], [0, 0, 1, 1], [], []>} : vector<16x8xf32>, vector<8x32xf32>, vector<16x32xf32> -> vector<16x32xf32>
    %64 = arith.addf %42, %63 : vector<16x32xf32>
    %65 = vector.extract_strided_slice %17 {offsets = [0, 16], sizes = [16, 8], strides = [1, 1]} : vector<16x96xf32> to vector<16x8xf32>
    %66 = vector.extract_strided_slice %17 {offsets = [0, 48], sizes = [16, 8], strides = [1, 1]} : vector<16x96xf32> to vector<16x8xf32>
    %67 = vector.extract_strided_slice %17 {offsets = [0, 80], sizes = [16, 8], strides = [1, 1]} : vector<16x96xf32> to vector<16x8xf32>
    %cst_27 = arith.constant dense<0.000000e+00> : vector<16x16xf32>
    %68 = tpu.matmul %65, %66, %cst_27 {dimension_numbers = #tpu.dot_dimension_numbers<[1], [1], [0], [0], [0, 0, 1, 0], [], []>} : vector<16x8xf32>, vector<16x8xf32>, vector<16x16xf32> -> vector<16x16xf32>
    %cst_28 = arith.constant 0.353553385 : f32
    %69 = vector.broadcast %cst_28 : f32 to vector<16x16xf32>
    %70 = arith.mulf %68, %69 : vector<16x16xf32>
    %71 = arith.mulf %70, %1 : vector<16x16xf32>
    %72 = arith.addf %71, %2 : vector<16x16xf32>
    %cst_29 = arith.constant dense<0xFF800000> : vector<16xf32>
    %73 = vector.multi_reduction <maximumf>, %72, %cst_29 [1] : vector<16x16xf32> to vector<16xf32>
    %74 = vector.shape_cast %73 : vector<16xf32> to vector<16x1xf32>
    %75 = vector.broadcast %74 : vector<16x1xf32> to vector<16x16xf32>
    %76 = arith.subf %72, %75 : vector<16x16xf32>
    %77 = math.exp %76 : vector<16x16xf32>
    %cst_30 = arith.constant dense<0.000000e+00> : vector<16xf32>
    %78 = vector.multi_reduction <add>, %77, %cst_30 [1] : vector<16x16xf32> to vector<16xf32>
    %79 = vector.shape_cast %78 : vector<16xf32> to vector<16x1xf32>
    %80 = tpu.reciprocal %79 {approx = true} : vector<16x1xf32> -> vector<16x1xf32>
    %81 = vector.broadcast %80 : vector<16x1xf32> to vector<16x16xf32>
    %82 = arith.mulf %77, %81 : vector<16x16xf32>
    %cst_31 = arith.constant dense<0.000000e+00> : vector<16x8xf32>
    %83 = tpu.matmul %82, %67, %cst_31 {dimension_numbers = #tpu.dot_dimension_numbers<[1], [0], [0], [1], [0, 0, 1, 1], [], []>} : vector<16x16xf32>, vector<16x8xf32>, vector<16x8xf32> -> vector<16x8xf32>
    %84 = vector.extract_strided_slice %19 {offsets = [16, 0], sizes = [8, 32], strides = [1, 1]} : vector<32x32xf32> to vector<8x32xf32>
    %cst_32 = arith.constant dense<0.000000e+00> : vector<16x32xf32>
    %85 = tpu.matmul %83, %84, %cst_32 {dimension_numbers = #tpu.dot_dimension_numbers<[1], [0], [0], [1], [0, 0, 1, 1], [], []>} : vector<16x8xf32>, vector<8x32xf32>, vector<16x32xf32> -> vector<16x32xf32>
    %86 = arith.addf %64, %85 : vector<16x32xf32>
    %87 = vector.extract_strided_slice %17 {offsets = [0, 24], sizes = [16, 8], strides = [1, 1]} : vector<16x96xf32> to vector<16x8xf32>
    %88 = vector.extract_strided_slice %17 {offsets = [0, 56], sizes = [16, 8], strides = [1, 1]} : vector<16x96xf32> to vector<16x8xf32>
    %89 = vector.extract_strided_slice %17 {offsets = [0, 88], sizes = [16, 8], strides = [1, 1]} : vector<16x96xf32> to vector<16x8xf32>
    %cst_33 = arith.constant dense<0.000000e+00> : vector<16x16xf32>
    %90 = tpu.matmul %87, %88, %cst_33 {dimension_numbers = #tpu.dot_dimension_numbers<[1], [1], [0], [0], [0, 0, 1, 0], [], []>} : vector<16x8xf32>, vector<16x8xf32>, vector<16x16xf32> -> vector<16x16xf32>
    %cst_34 = arith.constant 0.353553385 : f32
    %91 = vector.broadcast %cst_34 : f32 to vector<16x16xf32>
    %92 = arith.mulf %90, %91 : vector<16x16xf32>
    %93 = arith.mulf %92, %1 : vector<16x16xf32>
    %94 = arith.addf %93, %2 : vector<16x16xf32>
    %cst_35 = arith.constant dense<0xFF800000> : vector<16xf32>
    %95 = vector.multi_reduction <maximumf>, %94, %cst_35 [1] : vector<16x16xf32> to vector<16xf32>
    %96 = vector.shape_cast %95 : vector<16xf32> to vector<16x1xf32>
    %97 = vector.broadcast %96 : vector<16x1xf32> to vector<16x16xf32>
    %98 = arith.subf %94, %97 : vector<16x16xf32>
    %99 = math.exp %98 : vector<16x16xf32>
    %cst_36 = arith.constant dense<0.000000e+00> : vector<16xf32>
    %100 = vector.multi_reduction <add>, %99, %cst_36 [1] : vector<16x16xf32> to vector<16xf32>
    %101 = vector.shape_cast %100 : vector<16xf32> to vector<16x1xf32>
    %102 = tpu.reciprocal %101 {approx = true} : vector<16x1xf32> -> vector<16x1xf32>
    %103 = vector.broadcast %102 : vector<16x1xf32> to vector<16x16xf32>
    %104 = arith.mulf %99, %103 : vector<16x16xf32>
    %cst_37 = arith.constant dense<0.000000e+00> : vector<16x8xf32>
    %105 = tpu.matmul %104, %89, %cst_37 {dimension_numbers = #tpu.dot_dimension_numbers<[1], [0], [0], [1], [0, 0, 1, 1], [], []>} : vector<16x16xf32>, vector<16x8xf32>, vector<16x8xf32> -> vector<16x8xf32>
    %106 = vector.extract_strided_slice %19 {offsets = [24, 0], sizes = [8, 32], strides = [1, 1]} : vector<32x32xf32> to vector<8x32xf32>
    %cst_38 = arith.constant dense<0.000000e+00> : vector<16x32xf32>
    %107 = tpu.matmul %105, %106, %cst_38 {dimension_numbers = #tpu.dot_dimension_numbers<[1], [0], [0], [1], [0, 0, 1, 1], [], []>} : vector<16x8xf32>, vector<8x32xf32>, vector<16x32xf32> -> vector<16x32xf32>
    %108 = arith.addf %86, %107 : vector<16x32xf32>
    %109 = vector.broadcast %6 : vector<1x32xf32> to vector<16x32xf32>
    %110 = arith.addf %108, %109 : vector<16x32xf32>
    %111 = arith.addf %110, %0 : vector<16x32xf32>
    %cst_39 = arith.constant dense<0.000000e+00> : vector<16xf32>
    %112 = vector.multi_reduction <add>, %111, %cst_39 [1] : vector<16x32xf32> to vector<16xf32>
    %113 = vector.shape_cast %112 : vector<16xf32> to vector<16x1xf32>
    %cst_40 = arith.constant 3.200000e+01 : f32
    %114 = vector.broadcast %cst_40 : f32 to vector<16x1xf32>
    %115 = arith.divf %113, %114 : vector<16x1xf32>
    %116 = vector.broadcast %115 : vector<16x1xf32> to vector<16x32xf32>
    %117 = arith.subf %111, %116 : vector<16x32xf32>
    %118 = arith.mulf %117, %117 : vector<16x32xf32>
    %cst_41 = arith.constant dense<0.000000e+00> : vector<16xf32>
    %119 = vector.multi_reduction <add>, %118, %cst_41 [1] : vector<16x32xf32> to vector<16xf32>
    %120 = vector.shape_cast %119 : vector<16xf32> to vector<16x1xf32>
    %cst_42 = arith.constant 3.200000e+01 : f32
    %121 = vector.broadcast %cst_42 : f32 to vector<16x1xf32>
    %122 = arith.divf %120, %121 : vector<16x1xf32>
    %123 = vector.broadcast %115 : vector<16x1xf32> to vector<16x32xf32>
    %124 = arith.subf %111, %123 : vector<16x32xf32>
    %125 = vector.broadcast %7 : vector<1x32xf32> to vector<16x32xf32>
    %126 = arith.mulf %125, %124 : vector<16x32xf32>
    %cst_43 = arith.constant 9.99999996E-13 : f32
    %127 = vector.broadcast %cst_43 : f32 to vector<16x1xf32>
    %128 = arith.addf %122, %127 : vector<16x1xf32>
    %129 = math.rsqrt %128 : vector<16x1xf32>
    %130 = vector.broadcast %129 : vector<16x1xf32> to vector<16x32xf32>
    %131 = arith.mulf %126, %130 : vector<16x32xf32>
    %132 = vector.broadcast %8 : vector<1x32xf32> to vector<16x32xf32>
    %133 = arith.addf %131, %132 : vector<16x32xf32>
    %c0_44 = arith.constant 0 : index
    %c0_45 = arith.constant 0 : index
    %c0_46 = arith.constant 0 : index
    %134 = vector.load %arg5[%c0_44, %c0_45, %c0_46] : memref<2x32x64xf32, #tpu.memory_space<vmem>>, vector<1x32x64xf32>
    %135 = vector.shape_cast %134 : vector<1x32x64xf32> to vector<32x64xf32>
    %cst_47 = arith.constant dense<0.000000e+00> : vector<16x64xf32>
    %136 = tpu.matmul %133, %135, %cst_47 {dimension_numbers = #tpu.dot_dimension_numbers<[1], [0], [0], [1], [0, 0, 1, 1], [], []>} : vector<16x32xf32>, vector<32x64xf32>, vector<16x64xf32> -> vector<16x64xf32>
    %137 = vector.broadcast %9 : vector<1x64xf32> to vector<16x64xf32>
    %138 = arith.addf %136, %137 : vector<16x64xf32>
    %cst_48 = arith.constant 0.000000e+00 : f32
    %139 = vector.broadcast %cst_48 : f32 to vector<16x64xf32>
    %140 = arith.maximumf %138, %139 : vector<16x64xf32>
    %c0_49 = arith.constant 0 : index
    %c0_50 = arith.constant 0 : index
    %c0_51 = arith.constant 0 : index
    %141 = vector.load %arg6[%c0_49, %c0_50, %c0_51] : memref<2x64x32xf32, #tpu.memory_space<vmem>>, vector<1x64x32xf32>
    %142 = vector.shape_cast %141 : vector<1x64x32xf32> to vector<64x32xf32>
    %cst_52 = arith.constant dense<0.000000e+00> : vector<16x32xf32>
    %143 = tpu.matmul %140, %142, %cst_52 {dimension_numbers = #tpu.dot_dimension_numbers<[1], [0], [0], [1], [0, 0, 1, 1], [], []>} : vector<16x64xf32>, vector<64x32xf32>, vector<16x32xf32> -> vector<16x32xf32>
    %144 = vector.broadcast %10 : vector<1x32xf32> to vector<16x32xf32>
    %145 = arith.addf %143, %144 : vector<16x32xf32>
    %146 = arith.addf %145, %133 : vector<16x32xf32>
    %cst_53 = arith.constant dense<0.000000e+00> : vector<16xf32>
    %147 = vector.multi_reduction <add>, %146, %cst_53 [1] : vector<16x32xf32> to vector<16xf32>
    %148 = vector.shape_cast %147 : vector<16xf32> to vector<16x1xf32>
    %cst_54 = arith.constant 3.200000e+01 : f32
    %149 = vector.broadcast %cst_54 : f32 to vector<16x1xf32>
    %150 = arith.divf %148, %149 : vector<16x1xf32>
    %151 = vector.broadcast %150 : vector<16x1xf32> to vector<16x32xf32>
    %152 = arith.subf %146, %151 : vector<16x32xf32>
    %153 = arith.mulf %152, %152 : vector<16x32xf32>
    %cst_55 = arith.constant dense<0.000000e+00> : vector<16xf32>
    %154 = vector.multi_reduction <add>, %153, %cst_55 [1] : vector<16x32xf32> to vector<16xf32>
    %155 = vector.shape_cast %154 : vector<16xf32> to vector<16x1xf32>
    %cst_56 = arith.constant 3.200000e+01 : f32
    %156 = vector.broadcast %cst_56 : f32 to vector<16x1xf32>
    %157 = arith.divf %155, %156 : vector<16x1xf32>
    %158 = vector.broadcast %150 : vector<16x1xf32> to vector<16x32xf32>
    %159 = arith.subf %146, %158 : vector<16x32xf32>
    %160 = vector.broadcast %11 : vector<1x32xf32> to vector<16x32xf32>
    %161 = arith.mulf %160, %159 : vector<16x32xf32>
    %cst_57 = arith.constant 9.99999996E-13 : f32
    %162 = vector.broadcast %cst_57 : f32 to vector<16x1xf32>
    %163 = arith.addf %157, %162 : vector<16x1xf32>
    %164 = math.rsqrt %163 : vector<16x1xf32>
    %165 = vector.broadcast %164 : vector<16x1xf32> to vector<16x32xf32>
    %166 = arith.mulf %161, %165 : vector<16x32xf32>
    %167 = vector.broadcast %12 : vector<1x32xf32> to vector<16x32xf32>
    %168 = arith.addf %166, %167 : vector<16x32xf32>
    %c1 = arith.constant 1 : index
    %c0_58 = arith.constant 0 : index
    %c0_59 = arith.constant 0 : index
    %169 = vector.load %arg7[%c1, %c0_58, %c0_59] : memref<2x8x128xf32, #tpu.memory_space<vmem>>, vector<1x8x128xf32>
    %170 = vector.shape_cast %169 : vector<1x8x128xf32> to vector<8x128xf32>
    %171 = vector.extract_strided_slice %170 {offsets = [0, 0], sizes = [1, 96], strides = [1, 1]} : vector<8x128xf32> to vector<1x96xf32>
    %172 = vector.extract_strided_slice %170 {offsets = [1, 0], sizes = [1, 32], strides = [1, 1]} : vector<8x128xf32> to vector<1x32xf32>
    %173 = vector.extract_strided_slice %170 {offsets = [2, 0], sizes = [1, 32], strides = [1, 1]} : vector<8x128xf32> to vector<1x32xf32>
    %174 = vector.extract_strided_slice %170 {offsets = [3, 0], sizes = [1, 32], strides = [1, 1]} : vector<8x128xf32> to vector<1x32xf32>
    %175 = vector.extract_strided_slice %170 {offsets = [4, 0], sizes = [1, 64], strides = [1, 1]} : vector<8x128xf32> to vector<1x64xf32>
    %176 = vector.extract_strided_slice %170 {offsets = [5, 0], sizes = [1, 32], strides = [1, 1]} : vector<8x128xf32> to vector<1x32xf32>
    %177 = vector.extract_strided_slice %170 {offsets = [6, 0], sizes = [1, 32], strides = [1, 1]} : vector<8x128xf32> to vector<1x32xf32>
    %178 = vector.extract_strided_slice %170 {offsets = [7, 0], sizes = [1, 32], strides = [1, 1]} : vector<8x128xf32> to vector<1x32xf32>
    %c1_60 = arith.constant 1 : index
    %c0_61 = arith.constant 0 : index
    %c0_62 = arith.constant 0 : index
    %179 = vector.load %arg3[%c1_60, %c0_61, %c0_62] : memref<2x32x96xf32, #tpu.memory_space<vmem>>, vector<1x32x96xf32>
    %180 = vector.shape_cast %179 : vector<1x32x96xf32> to vector<32x96xf32>
    %cst_63 = arith.constant dense<0.000000e+00> : vector<16x96xf32>
    %181 = tpu.matmul %168, %180, %cst_63 {dimension_numbers = #tpu.dot_dimension_numbers<[1], [0], [0], [1], [0, 0, 1, 1], [], []>} : vector<16x32xf32>, vector<32x96xf32>, vector<16x96xf32> -> vector<16x96xf32>
    %182 = vector.broadcast %171 : vector<1x96xf32> to vector<16x96xf32>
    %183 = arith.addf %181, %182 : vector<16x96xf32>
    %c1_64 = arith.constant 1 : index
    %c0_65 = arith.constant 0 : index
    %c0_66 = arith.constant 0 : index
    %184 = vector.load %arg4[%c1_64, %c0_65, %c0_66] : memref<2x32x32xf32, #tpu.memory_space<vmem>>, vector<1x32x32xf32>
    %185 = vector.shape_cast %184 : vector<1x32x32xf32> to vector<32x32xf32>
    %cst_67 = arith.constant 0.000000e+00 : f32
    %186 = vector.broadcast %cst_67 : f32 to vector<16x32xf32>
    %187 = vector.extract_strided_slice %183 {offsets = [0, 0], sizes = [16, 8], strides = [1, 1]} : vector<16x96xf32> to vector<16x8xf32>
    %188 = vector.extract_strided_slice %183 {offsets = [0, 32], sizes = [16, 8], strides = [1, 1]} : vector<16x96xf32> to vector<16x8xf32>
    %189 = vector.extract_strided_slice %183 {offsets = [0, 64], sizes = [16, 8], strides = [1, 1]} : vector<16x96xf32> to vector<16x8xf32>
    %cst_68 = arith.constant dense<0.000000e+00> : vector<16x16xf32>
    %190 = tpu.matmul %187, %188, %cst_68 {dimension_numbers = #tpu.dot_dimension_numbers<[1], [1], [0], [0], [0, 0, 1, 0], [], []>} : vector<16x8xf32>, vector<16x8xf32>, vector<16x16xf32> -> vector<16x16xf32>
    %cst_69 = arith.constant 0.353553385 : f32
    %191 = vector.broadcast %cst_69 : f32 to vector<16x16xf32>
    %192 = arith.mulf %190, %191 : vector<16x16xf32>
    %193 = arith.mulf %192, %1 : vector<16x16xf32>
    %194 = arith.addf %193, %2 : vector<16x16xf32>
    %cst_70 = arith.constant dense<0xFF800000> : vector<16xf32>
    %195 = vector.multi_reduction <maximumf>, %194, %cst_70 [1] : vector<16x16xf32> to vector<16xf32>
    %196 = vector.shape_cast %195 : vector<16xf32> to vector<16x1xf32>
    %197 = vector.broadcast %196 : vector<16x1xf32> to vector<16x16xf32>
    %198 = arith.subf %194, %197 : vector<16x16xf32>
    %199 = math.exp %198 : vector<16x16xf32>
    %cst_71 = arith.constant dense<0.000000e+00> : vector<16xf32>
    %200 = vector.multi_reduction <add>, %199, %cst_71 [1] : vector<16x16xf32> to vector<16xf32>
    %201 = vector.shape_cast %200 : vector<16xf32> to vector<16x1xf32>
    %202 = tpu.reciprocal %201 {approx = true} : vector<16x1xf32> -> vector<16x1xf32>
    %203 = vector.broadcast %202 : vector<16x1xf32> to vector<16x16xf32>
    %204 = arith.mulf %199, %203 : vector<16x16xf32>
    %cst_72 = arith.constant dense<0.000000e+00> : vector<16x8xf32>
    %205 = tpu.matmul %204, %189, %cst_72 {dimension_numbers = #tpu.dot_dimension_numbers<[1], [0], [0], [1], [0, 0, 1, 1], [], []>} : vector<16x16xf32>, vector<16x8xf32>, vector<16x8xf32> -> vector<16x8xf32>
    %206 = vector.extract_strided_slice %185 {offsets = [0, 0], sizes = [8, 32], strides = [1, 1]} : vector<32x32xf32> to vector<8x32xf32>
    %cst_73 = arith.constant dense<0.000000e+00> : vector<16x32xf32>
    %207 = tpu.matmul %205, %206, %cst_73 {dimension_numbers = #tpu.dot_dimension_numbers<[1], [0], [0], [1], [0, 0, 1, 1], [], []>} : vector<16x8xf32>, vector<8x32xf32>, vector<16x32xf32> -> vector<16x32xf32>
    %208 = arith.addf %186, %207 : vector<16x32xf32>
    %209 = vector.extract_strided_slice %183 {offsets = [0, 8], sizes = [16, 8], strides = [1, 1]} : vector<16x96xf32> to vector<16x8xf32>
    %210 = vector.extract_strided_slice %183 {offsets = [0, 40], sizes = [16, 8], strides = [1, 1]} : vector<16x96xf32> to vector<16x8xf32>
    %211 = vector.extract_strided_slice %183 {offsets = [0, 72], sizes = [16, 8], strides = [1, 1]} : vector<16x96xf32> to vector<16x8xf32>
    %cst_74 = arith.constant dense<0.000000e+00> : vector<16x16xf32>
    %212 = tpu.matmul %209, %210, %cst_74 {dimension_numbers = #tpu.dot_dimension_numbers<[1], [1], [0], [0], [0, 0, 1, 0], [], []>} : vector<16x8xf32>, vector<16x8xf32>, vector<16x16xf32> -> vector<16x16xf32>
    %cst_75 = arith.constant 0.353553385 : f32
    %213 = vector.broadcast %cst_75 : f32 to vector<16x16xf32>
    %214 = arith.mulf %212, %213 : vector<16x16xf32>
    %215 = arith.mulf %214, %1 : vector<16x16xf32>
    %216 = arith.addf %215, %2 : vector<16x16xf32>
    %cst_76 = arith.constant dense<0xFF800000> : vector<16xf32>
    %217 = vector.multi_reduction <maximumf>, %216, %cst_76 [1] : vector<16x16xf32> to vector<16xf32>
    %218 = vector.shape_cast %217 : vector<16xf32> to vector<16x1xf32>
    %219 = vector.broadcast %218 : vector<16x1xf32> to vector<16x16xf32>
    %220 = arith.subf %216, %219 : vector<16x16xf32>
    %221 = math.exp %220 : vector<16x16xf32>
    %cst_77 = arith.constant dense<0.000000e+00> : vector<16xf32>
    %222 = vector.multi_reduction <add>, %221, %cst_77 [1] : vector<16x16xf32> to vector<16xf32>
    %223 = vector.shape_cast %222 : vector<16xf32> to vector<16x1xf32>
    %224 = tpu.reciprocal %223 {approx = true} : vector<16x1xf32> -> vector<16x1xf32>
    %225 = vector.broadcast %224 : vector<16x1xf32> to vector<16x16xf32>
    %226 = arith.mulf %221, %225 : vector<16x16xf32>
    %cst_78 = arith.constant dense<0.000000e+00> : vector<16x8xf32>
    %227 = tpu.matmul %226, %211, %cst_78 {dimension_numbers = #tpu.dot_dimension_numbers<[1], [0], [0], [1], [0, 0, 1, 1], [], []>} : vector<16x16xf32>, vector<16x8xf32>, vector<16x8xf32> -> vector<16x8xf32>
    %228 = vector.extract_strided_slice %185 {offsets = [8, 0], sizes = [8, 32], strides = [1, 1]} : vector<32x32xf32> to vector<8x32xf32>
    %cst_79 = arith.constant dense<0.000000e+00> : vector<16x32xf32>
    %229 = tpu.matmul %227, %228, %cst_79 {dimension_numbers = #tpu.dot_dimension_numbers<[1], [0], [0], [1], [0, 0, 1, 1], [], []>} : vector<16x8xf32>, vector<8x32xf32>, vector<16x32xf32> -> vector<16x32xf32>
    %230 = arith.addf %208, %229 : vector<16x32xf32>
    %231 = vector.extract_strided_slice %183 {offsets = [0, 16], sizes = [16, 8], strides = [1, 1]} : vector<16x96xf32> to vector<16x8xf32>
    %232 = vector.extract_strided_slice %183 {offsets = [0, 48], sizes = [16, 8], strides = [1, 1]} : vector<16x96xf32> to vector<16x8xf32>
    %233 = vector.extract_strided_slice %183 {offsets = [0, 80], sizes = [16, 8], strides = [1, 1]} : vector<16x96xf32> to vector<16x8xf32>
    %cst_80 = arith.constant dense<0.000000e+00> : vector<16x16xf32>
    %234 = tpu.matmul %231, %232, %cst_80 {dimension_numbers = #tpu.dot_dimension_numbers<[1], [1], [0], [0], [0, 0, 1, 0], [], []>} : vector<16x8xf32>, vector<16x8xf32>, vector<16x16xf32> -> vector<16x16xf32>
    %cst_81 = arith.constant 0.353553385 : f32
    %235 = vector.broadcast %cst_81 : f32 to vector<16x16xf32>
    %236 = arith.mulf %234, %235 : vector<16x16xf32>
    %237 = arith.mulf %236, %1 : vector<16x16xf32>
    %238 = arith.addf %237, %2 : vector<16x16xf32>
    %cst_82 = arith.constant dense<0xFF800000> : vector<16xf32>
    %239 = vector.multi_reduction <maximumf>, %238, %cst_82 [1] : vector<16x16xf32> to vector<16xf32>
    %240 = vector.shape_cast %239 : vector<16xf32> to vector<16x1xf32>
    %241 = vector.broadcast %240 : vector<16x1xf32> to vector<16x16xf32>
    %242 = arith.subf %238, %241 : vector<16x16xf32>
    %243 = math.exp %242 : vector<16x16xf32>
    %cst_83 = arith.constant dense<0.000000e+00> : vector<16xf32>
    %244 = vector.multi_reduction <add>, %243, %cst_83 [1] : vector<16x16xf32> to vector<16xf32>
    %245 = vector.shape_cast %244 : vector<16xf32> to vector<16x1xf32>
    %246 = tpu.reciprocal %245 {approx = true} : vector<16x1xf32> -> vector<16x1xf32>
    %247 = vector.broadcast %246 : vector<16x1xf32> to vector<16x16xf32>
    %248 = arith.mulf %243, %247 : vector<16x16xf32>
    %cst_84 = arith.constant dense<0.000000e+00> : vector<16x8xf32>
    %249 = tpu.matmul %248, %233, %cst_84 {dimension_numbers = #tpu.dot_dimension_numbers<[1], [0], [0], [1], [0, 0, 1, 1], [], []>} : vector<16x16xf32>, vector<16x8xf32>, vector<16x8xf32> -> vector<16x8xf32>
    %250 = vector.extract_strided_slice %185 {offsets = [16, 0], sizes = [8, 32], strides = [1, 1]} : vector<32x32xf32> to vector<8x32xf32>
    %cst_85 = arith.constant dense<0.000000e+00> : vector<16x32xf32>
    %251 = tpu.matmul %249, %250, %cst_85 {dimension_numbers = #tpu.dot_dimension_numbers<[1], [0], [0], [1], [0, 0, 1, 1], [], []>} : vector<16x8xf32>, vector<8x32xf32>, vector<16x32xf32> -> vector<16x32xf32>
    %252 = arith.addf %230, %251 : vector<16x32xf32>
    %253 = vector.extract_strided_slice %183 {offsets = [0, 24], sizes = [16, 8], strides = [1, 1]} : vector<16x96xf32> to vector<16x8xf32>
    %254 = vector.extract_strided_slice %183 {offsets = [0, 56], sizes = [16, 8], strides = [1, 1]} : vector<16x96xf32> to vector<16x8xf32>
    %255 = vector.extract_strided_slice %183 {offsets = [0, 88], sizes = [16, 8], strides = [1, 1]} : vector<16x96xf32> to vector<16x8xf32>
    %cst_86 = arith.constant dense<0.000000e+00> : vector<16x16xf32>
    %256 = tpu.matmul %253, %254, %cst_86 {dimension_numbers = #tpu.dot_dimension_numbers<[1], [1], [0], [0], [0, 0, 1, 0], [], []>} : vector<16x8xf32>, vector<16x8xf32>, vector<16x16xf32> -> vector<16x16xf32>
    %cst_87 = arith.constant 0.353553385 : f32
    %257 = vector.broadcast %cst_87 : f32 to vector<16x16xf32>
    %258 = arith.mulf %256, %257 : vector<16x16xf32>
    %259 = arith.mulf %258, %1 : vector<16x16xf32>
    %260 = arith.addf %259, %2 : vector<16x16xf32>
    %cst_88 = arith.constant dense<0xFF800000> : vector<16xf32>
    %261 = vector.multi_reduction <maximumf>, %260, %cst_88 [1] : vector<16x16xf32> to vector<16xf32>
    %262 = vector.shape_cast %261 : vector<16xf32> to vector<16x1xf32>
    %263 = vector.broadcast %262 : vector<16x1xf32> to vector<16x16xf32>
    %264 = arith.subf %260, %263 : vector<16x16xf32>
    %265 = math.exp %264 : vector<16x16xf32>
    %cst_89 = arith.constant dense<0.000000e+00> : vector<16xf32>
    %266 = vector.multi_reduction <add>, %265, %cst_89 [1] : vector<16x16xf32> to vector<16xf32>
    %267 = vector.shape_cast %266 : vector<16xf32> to vector<16x1xf32>
    %268 = tpu.reciprocal %267 {approx = true} : vector<16x1xf32> -> vector<16x1xf32>
    %269 = vector.broadcast %268 : vector<16x1xf32> to vector<16x16xf32>
    %270 = arith.mulf %265, %269 : vector<16x16xf32>
    %cst_90 = arith.constant dense<0.000000e+00> : vector<16x8xf32>
    %271 = tpu.matmul %270, %255, %cst_90 {dimension_numbers = #tpu.dot_dimension_numbers<[1], [0], [0], [1], [0, 0, 1, 1], [], []>} : vector<16x16xf32>, vector<16x8xf32>, vector<16x8xf32> -> vector<16x8xf32>
    %272 = vector.extract_strided_slice %185 {offsets = [24, 0], sizes = [8, 32], strides = [1, 1]} : vector<32x32xf32> to vector<8x32xf32>
    %cst_91 = arith.constant dense<0.000000e+00> : vector<16x32xf32>
    %273 = tpu.matmul %271, %272, %cst_91 {dimension_numbers = #tpu.dot_dimension_numbers<[1], [0], [0], [1], [0, 0, 1, 1], [], []>} : vector<16x8xf32>, vector<8x32xf32>, vector<16x32xf32> -> vector<16x32xf32>
    %274 = arith.addf %252, %273 : vector<16x32xf32>
    %275 = vector.broadcast %172 : vector<1x32xf32> to vector<16x32xf32>
    %276 = arith.addf %274, %275 : vector<16x32xf32>
    %277 = arith.addf %276, %168 : vector<16x32xf32>
    %cst_92 = arith.constant dense<0.000000e+00> : vector<16xf32>
    %278 = vector.multi_reduction <add>, %277, %cst_92 [1] : vector<16x32xf32> to vector<16xf32>
    %279 = vector.shape_cast %278 : vector<16xf32> to vector<16x1xf32>
    %cst_93 = arith.constant 3.200000e+01 : f32
    %280 = vector.broadcast %cst_93 : f32 to vector<16x1xf32>
    %281 = arith.divf %279, %280 : vector<16x1xf32>
    %282 = vector.broadcast %281 : vector<16x1xf32> to vector<16x32xf32>
    %283 = arith.subf %277, %282 : vector<16x32xf32>
    %284 = arith.mulf %283, %283 : vector<16x32xf32>
    %cst_94 = arith.constant dense<0.000000e+00> : vector<16xf32>
    %285 = vector.multi_reduction <add>, %284, %cst_94 [1] : vector<16x32xf32> to vector<16xf32>
    %286 = vector.shape_cast %285 : vector<16xf32> to vector<16x1xf32>
    %cst_95 = arith.constant 3.200000e+01 : f32
    %287 = vector.broadcast %cst_95 : f32 to vector<16x1xf32>
    %288 = arith.divf %286, %287 : vector<16x1xf32>
    %289 = vector.broadcast %281 : vector<16x1xf32> to vector<16x32xf32>
    %290 = arith.subf %277, %289 : vector<16x32xf32>
    %291 = vector.broadcast %173 : vector<1x32xf32> to vector<16x32xf32>
    %292 = arith.mulf %291, %290 : vector<16x32xf32>
    %cst_96 = arith.constant 9.99999996E-13 : f32
    %293 = vector.broadcast %cst_96 : f32 to vector<16x1xf32>
    %294 = arith.addf %288, %293 : vector<16x1xf32>
    %295 = math.rsqrt %294 : vector<16x1xf32>
    %296 = vector.broadcast %295 : vector<16x1xf32> to vector<16x32xf32>
    %297 = arith.mulf %292, %296 : vector<16x32xf32>
    %298 = vector.broadcast %174 : vector<1x32xf32> to vector<16x32xf32>
    %299 = arith.addf %297, %298 : vector<16x32xf32>
    %c1_97 = arith.constant 1 : index
    %c0_98 = arith.constant 0 : index
    %c0_99 = arith.constant 0 : index
    %300 = vector.load %arg5[%c1_97, %c0_98, %c0_99] : memref<2x32x64xf32, #tpu.memory_space<vmem>>, vector<1x32x64xf32>
    %301 = vector.shape_cast %300 : vector<1x32x64xf32> to vector<32x64xf32>
    %cst_100 = arith.constant dense<0.000000e+00> : vector<16x64xf32>
    %302 = tpu.matmul %299, %301, %cst_100 {dimension_numbers = #tpu.dot_dimension_numbers<[1], [0], [0], [1], [0, 0, 1, 1], [], []>} : vector<16x32xf32>, vector<32x64xf32>, vector<16x64xf32> -> vector<16x64xf32>
    %303 = vector.broadcast %175 : vector<1x64xf32> to vector<16x64xf32>
    %304 = arith.addf %302, %303 : vector<16x64xf32>
    %cst_101 = arith.constant 0.000000e+00 : f32
    %305 = vector.broadcast %cst_101 : f32 to vector<16x64xf32>
    %306 = arith.maximumf %304, %305 : vector<16x64xf32>
    %c1_102 = arith.constant 1 : index
    %c0_103 = arith.constant 0 : index
    %c0_104 = arith.constant 0 : index
    %307 = vector.load %arg6[%c1_102, %c0_103, %c0_104] : memref<2x64x32xf32, #tpu.memory_space<vmem>>, vector<1x64x32xf32>
    %308 = vector.shape_cast %307 : vector<1x64x32xf32> to vector<64x32xf32>
    %cst_105 = arith.constant dense<0.000000e+00> : vector<16x32xf32>
    %309 = tpu.matmul %306, %308, %cst_105 {dimension_numbers = #tpu.dot_dimension_numbers<[1], [0], [0], [1], [0, 0, 1, 1], [], []>} : vector<16x64xf32>, vector<64x32xf32>, vector<16x32xf32> -> vector<16x32xf32>
    %310 = vector.broadcast %176 : vector<1x32xf32> to vector<16x32xf32>
    %311 = arith.addf %309, %310 : vector<16x32xf32>
    %312 = arith.addf %311, %299 : vector<16x32xf32>
    %cst_106 = arith.constant dense<0.000000e+00> : vector<16xf32>
    %313 = vector.multi_reduction <add>, %312, %cst_106 [1] : vector<16x32xf32> to vector<16xf32>
    %314 = vector.shape_cast %313 : vector<16xf32> to vector<16x1xf32>
    %cst_107 = arith.constant 3.200000e+01 : f32
    %315 = vector.broadcast %cst_107 : f32 to vector<16x1xf32>
    %316 = arith.divf %314, %315 : vector<16x1xf32>
    %317 = vector.broadcast %316 : vector<16x1xf32> to vector<16x32xf32>
    %318 = arith.subf %312, %317 : vector<16x32xf32>
    %319 = arith.mulf %318, %318 : vector<16x32xf32>
    %cst_108 = arith.constant dense<0.000000e+00> : vector<16xf32>
    %320 = vector.multi_reduction <add>, %319, %cst_108 [1] : vector<16x32xf32> to vector<16xf32>
    %321 = vector.shape_cast %320 : vector<16xf32> to vector<16x1xf32>
    %cst_109 = arith.constant 3.200000e+01 : f32
    %322 = vector.broadcast %cst_109 : f32 to vector<16x1xf32>
    %323 = arith.divf %321, %322 : vector<16x1xf32>
    %324 = vector.broadcast %316 : vector<16x1xf32> to vector<16x32xf32>
    %325 = arith.subf %312, %324 : vector<16x32xf32>
    %326 = vector.broadcast %177 : vector<1x32xf32> to vector<16x32xf32>
    %327 = arith.mulf %326, %325 : vector<16x32xf32>
    %cst_110 = arith.constant 9.99999996E-13 : f32
    %328 = vector.broadcast %cst_110 : f32 to vector<16x1xf32>
    %329 = arith.addf %323, %328 : vector<16x1xf32>
    %330 = math.rsqrt %329 : vector<16x1xf32>
    %331 = vector.broadcast %330 : vector<16x1xf32> to vector<16x32xf32>
    %332 = arith.mulf %327, %331 : vector<16x32xf32>
    %333 = vector.broadcast %178 : vector<1x32xf32> to vector<16x32xf32>
    %334 = arith.addf %332, %333 : vector<16x32xf32>
    %c0_111 = arith.constant 0 : index
    %c0_112 = arith.constant 0 : index
    %335 = vector.load %arg8[%c0_111, %c0_112] : memref<32x128xf32, #tpu.memory_space<vmem>>, vector<32x128xf32>
    %cst_113 = arith.constant dense<0.000000e+00> : vector<16x128xf32>
    %336 = tpu.matmul %334, %335, %cst_113 {dimension_numbers = #tpu.dot_dimension_numbers<[1], [0], [0], [1], [0, 0, 1, 1], [], []>} : vector<16x32xf32>, vector<32x128xf32>, vector<16x128xf32> -> vector<16x128xf32>
    %c0_114 = arith.constant 0 : index
    %c0_115 = arith.constant 0 : index
    %337 = vector.load %arg9[%c0_114, %c0_115] : memref<1x128xf32, #tpu.memory_space<vmem>>, vector<1x128xf32>
    %338 = vector.broadcast %337 : vector<1x128xf32> to vector<16x128xf32>
    %339 = arith.addf %336, %338 : vector<16x128xf32>
    %c0_116 = arith.constant 0 : index
    %c0_117 = arith.constant 0 : index
    %340 = vector.load %arg10[%c0_116, %c0_117] : memref<16x128xf32, #tpu.memory_space<vmem>>, vector<16x128xf32>
    tpu.vector_store %arg10[%c0_116, %c0_117], %339 {strides = array<i32>} : memref<16x128xf32, #tpu.memory_space<vmem>>, vector<16x128xf32>,
    return
  }
}

</mosaic_0001>

<bundles_post_ra>
// kernel: tpu_custom_call.1
= control target key start
LH: loop header
LB: loop body
LE: loop exit
PB: predicated region body
PF: predicated region fallthrough
CT: control target
= control target key end

     0   :  { %15 = vsyncpa [#allocation3], 0  ;;  %s4571_s0 = inlined_call_operand.hbm [shape: f32[16,32], index: 0, kind: input, shape index: {}]   ;;  %s4572_s1 = inlined_call_operand.hbm [shape: f32[16,16], index: 1, kind: input, shape index: {}]   ;;  %s4573_s2 = inlined_call_operand.hbm [shape: f32[16,16], index: 2, kind: input, shape index: {}]   ;;  %s4574_s3 = inlined_call_operand.vmem [shape: f32[2,32,96], index: 3, kind: input, shape index: {}]   ;;  %s4575_s4 = inlined_call_operand.vmem [shape: f32[2,32,32], index: 4, kind: input, shape index: {}]   ;;  %s4576_s5 = inlined_call_operand.vmem [shape: f32[2,32,64], index: 5, kind: input, shape index: {}]   ;;  %s4577_s6 = inlined_call_operand.vmem [shape: f32[2,64,32], index: 6, kind: input, shape index: {}]   ;;  %s4578_s7 = inlined_call_operand.hbm [shape: f32[2,8,128], index: 7, kind: input, shape index: {}]   ;;  %s4579_s8 = inlined_call_operand.hbm [shape: f32[32,128], index: 8, kind: input, shape index: {}]   ;;  %s4580_s9 = inlined_call_operand.vmem [shape: f32[1,128], index: 9, kind: input, shape index: {}]   ;;  %s4581_s10 = inlined_call_operand.hbm [shape: f32[16,128], index: 10, kind: output, shape index: {}]  }
   0x1   :  { %16 = vsyncpa [#allocation6], 0 }
   0x2   :  { %17 = vsyncpa [#allocation9], 0 }
   0x3   :  { %18 = vsyncpa [#allocation4], 0  ;;  %s3974_s13 = smov [#allocation5]   ;;  %s3975_s15 = smov [#allocation8]  }
   0x4   :  { %s36_s14 = sshll.u32 %s3974_s13, 4  ;;  %s68_s16 = sshll.u32 %s3975_s15, 4  ;;  %s37_s14 = int_to_ptr.vmem [resolvable:$true] %s36_s14  ;;  %s69_s16 = int_to_ptr.vmem [resolvable:$true] %s68_s16 }
   0x5   :  { %s3854_s17 = scalar_lea.vmem %s37_s14, 256  ;;  %p3859_p1 = scmp.lt.s32.totalorder %s37_s14, %s37_s14 }
   0x6   :  { %p3855_p0 = scmp.ne.s32.totalorder %s37_s14, %s3854_s17  ;;  %p3860_p2 = scmp.lt.s32.totalorder %s3854_s17, %s3854_s17 }
   0x8   :  { %p3861_p3 = por %p3860_p2, %p3859_p1 }
   0xa   :  { %p3862_p4 = pnand %p3861_p3, %p3855_p0 }
   0xc   :  { %3865 = shalt.err (!%p3862_p4)
}
   0xd   :  { %s3976_s18 = smov 128   ;;  %s3977_s19 = smov 8  }
   0xe   :  { %42 = dma.hbm_to_vmem [thread:$0]  %s4572_s1, 256, %s37_s14, [#allocation6], %s3976_s18, %s3976_s18, %s3977_s19  }
   0xf   :  { %s3874_s22 = scalar_lea.vmem %s69_s16, 256  ;;  %p3879_p6 = scmp.lt.s32.totalorder %s69_s16, %s69_s16 }
  0x10   :  { %p3875_p5 = scmp.ne.s32.totalorder %s69_s16, %s3874_s22  ;;  %p3880_p7 = scmp.lt.s32.totalorder %s3874_s22, %s3874_s22 }
  0x12   :  { %p3881_p8 = por %p3880_p7, %p3879_p6 }
  0x14   :  { %p3882_p9 = pnand %p3881_p8, %p3875_p5 }
  0x16   :  { %3885 = shalt.err (!%p3882_p9)
}
  0x17   :  { %74 = dma.hbm_to_vmem [thread:$0]  %s4578_s7, 256, %s69_s16, [#allocation9], %s3976_s18, %s3976_s18, %s3977_s19  }
  0x18   :  { %s3978_s25 = smov [#allocation2]   ;;  %s3979_s27 = smov [#allocation7]  }
  0x19   :  { %s24_s26 = sshll.u32 %s3978_s25, 4  ;;  %s48_s28 = sshll.u32 %s3979_s27, 4  ;;  %s25_s26 = int_to_ptr.vmem [resolvable:$true] %s24_s26  ;;  %s49_s28 = int_to_ptr.vmem [resolvable:$true] %s48_s28 }
  0x1a   :  { %s3894_s1 = scalar_lea.vmem %s25_s26, 256  ;;  %p3899_p11 = scmp.lt.s32.totalorder %s25_s26, %s25_s26 }
  0x1b   :  { %p3895_p10 = scmp.ne.s32.totalorder %s25_s26, %s3894_s1  ;;  %p3900_p12 = scmp.lt.s32.totalorder %s3894_s1, %s3894_s1 }
  0x1d   :  { %p3901_p13 = por %p3900_p12, %p3899_p11 }
  0x1f   :  { %p3902_p0 = pnand %p3901_p13, %p3895_p10 }
  0x21   :  { %3905 = shalt.err (!%p3902_p0)
}
  0x22   :  { %30 = dma.hbm_to_vmem [thread:$0]  %s4571_s0, 256, %s25_s26, [#allocation3], %s3976_s18, %s3976_s18, %s3977_s19  }
  0x23   :  { %s3914_s7 = scalar_lea.vmem %s49_s28, 256  ;;  %p3919_p2 = scmp.lt.s32.totalorder %s49_s28, %s49_s28 }
  0x24   :  { %p3915_p1 = scmp.ne.s32.totalorder %s49_s28, %s3914_s7  ;;  %p3920_p3 = scmp.lt.s32.totalorder %s3914_s7, %s3914_s7 }
  0x26   :  { %p3921_p4 = por %p3920_p3, %p3919_p2 }
  0x28   :  { %p3922_p5 = pnand %p3921_p4, %p3915_p1 }
  0x2a   :  { %3925 = shalt.err (!%p3922_p5)
}
  0x2b   :  { %54 = dma.hbm_to_vmem [thread:$0]  %s4573_s2, 256, %s49_s28, [#allocation6], %s3976_s18, %s3976_s18, %s3977_s19  }
  0x2c   :  { %s3980_s13 = smov [#allocation10]  }
  0x2d   :  { %s80_s14 = sshll.u32 %s3980_s13, 4  ;;  %s81_s14 = int_to_ptr.vmem [resolvable:$true] %s80_s14 }
  0x2e   :  { %s3934_s15 = scalar_lea.vmem %s81_s14, 512  ;;  %p3939_p7 = scmp.lt.s32.totalorder %s81_s14, %s81_s14 }
  0x2f   :  { %p3935_p6 = scmp.ne.s32.totalorder %s81_s14, %s3934_s15  ;;  %p3940_p8 = scmp.lt.s32.totalorder %s3934_s15, %s3934_s15 }
  0x31   :  { %p3941_p9 = por %p3940_p8, %p3939_p7 }
  0x33   :  { %p3942_p10 = pnand %p3941_p9, %p3935_p6 }
  0x35   :  { %3945 = shalt.err (!%p3942_p10)
}
  0x36   :  { %86 = dma.hbm_to_vmem [thread:$0]  %s4579_s8, 512, %s81_s14, [#allocation9], %s3976_s18, %s3976_s18, %s3977_s19  }
  0x37   :  { %3966 = dma.done.wait [#allocation3], 256  }
  0x38   :  { %3967 = vsyncadd [#allocation3], 4294967040 }
  0x39   :  { %3968 = dma.done.wait [#allocation6], 512  }
  0x3a   :  { %3969 = vsyncadd [#allocation6], 4294966784 }
  0x3b   :  { %3970 = dma.done.wait [#allocation9], 768  }
  0x3c   :  { %3971 = vsyncadd [#allocation9], 4294966528  ;;  %vm119_vm0 = vcmask 261120   ;;  %v114_v0 = vld [vmem:[%s4574_s3 + $0x18] sm:$0xff]  ;;  %v113_v1 = vld [vmem:[%s4574_s3 + $0x10] sm:$0xff]  ;;  %v115_v6 = vlaneseq  ;;  %vm211_vm1 = vcmask 64512  }
  0x3d   :  { %3498 = vmatprep.subr.mxu0 %v114_v0  ;;  %v4084_v2 = vld [vmem:[#allocation2] sm:$0xff]  ;;  %v112_v3 = vld [vmem:[%s4574_s3 + $0x8] sm:$0xff]  ;;  %v4101_v9 = vld [vmem:[#allocation8] sm:$0xff]  ;;  %s3981_s25 = smov 88   ;;  %s3982_s26 = smov 96   ;;  %vm301_vm2 = vcmask 130048  }
  0x3e   :  { %3499 = vmatpush3.msra.mxu0 %v114_v0  ;;  %3506 = vmatprep.mubr.msk.f32.mxu0 %vm119_vm0, %v4084_v2  ;;  %v111_v4 = vld [vmem:[%s4574_s3] sm:$0xff]  ;;  %v4094_v5 = vld [vmem:[#allocation2 + $0x8] sm:$0xff]  ;;  %v4098_v7 = vshrl.u32 %v115_v6, 7  ;;  %s3983_s27 = smov 120   ;;  %v4136_v21 = vld [vmem:[#allocation5 + $0x8] sm:$0xff]  ;;  %s3984_s28 = smov 64  }
  0x3f   :  { %3500 = vmatprep.subr.mxu0 %v113_v1  ;;  %v4138_v24 = vld [vmem:[#allocation5] sm:$0xff]  ;;  %v4140_v26 = vld [vmem:[#allocation7 + $0x8] sm:$0xff]  ;;  %v4143_v29 = vld [vmem:[#allocation7] sm:$0xff]  ;;  %s3985_s1 = smov 56   ;;  %s3986_s29 = smov 80   ;;  %vm1507_vm3 = vcmask 523264  }
  0x40   :  { %3501 = vmatpush3.msra.mxu0 %v113_v1  ;;  %v117_v8 = vsub.s32 0, %v4098_v7  ;;  %s3987_s30 = smov 112   ;;  %s3988_s7 = smov 72  }
  0x41   :  { %3502 = vmatprep.subr.mxu0 %v112_v3  ;;  %s3989_s11 = smov 104   ;;  %s3990_s0 = smov 48  }
  0x42   :  { %3503 = vmatpush3.msra.mxu0 %v112_v3  ;;  %v118_v10 = vrot.slane %v4101_v9, %v117_v8  ;;  %s3991_s16 = smov 40  }
  0x43   :  { %3504 = vmatprep.subr.mxu0 %v111_v4 }
  0x44   :  { %3505 = vmatpush3.msra.mxu0 %v111_v4 }
  0x45   :  { %3507 = vmatmul.mubr.msk.f32.vlgmr.msra.gmra.mxu0 %vm119_vm0, %v4094_v5 }
 0x105   :  { %v3508_v11 = vpop.f32.mrf.mxu0 }
 0x106   :  { %v4106_v12 = vadd.f32 %v3508_v11, %v118_v10 }
 0x107   :  { %v192_v13 = vpop.f32.mrf.mxu0 }
 0x108   :  { %v4108_v14 = vadd.f32 %v192_v13, %v118_v10  ;;  %417 = vrot.lane.b32.xlu1 %v4106_v12, %s3981_s25  ;;  %209 = vrot.lane.b32.xlu0 %v4106_v12, %s3982_s26 }
 0x10a   :  { %3513 = vmatprep.mubr.msk.f32.mxu1 %vm211_vm1, %v4108_v14 }
 0x10c   :  { %415 = vrot.lane.b32.xlu1 %v4108_v14, %s3981_s25  ;;  %207 = vrot.lane.b32.xlu0 %v4108_v14, %s3982_s26 }
 0x110   :  { %413 = vrot.lane.b32.xlu1 %v4106_v12, %s3983_s27  ;;  %411 = vrot.lane.b32.xlu0 %v4108_v14, %s3983_s27 }
 0x17a   :  { %v210_v15 = vpop.permute.xlu0 %209  ;;  %v418_v16 = vpop.permute.xlu1 %417 }
 0x17b   :  { %3509 = vmatprep.subr.msk.mxu1 %vm211_vm1, %v210_v15 }
 0x17c   :  { %3510 = vmatpush3.xpose.msk.msra.mxu1 %vm211_vm1, %v210_v15 }
 0x17e   :  { %v208_v17 = vpop.permute.xlu0 %207  ;;  %v416_v19 = vpop.permute.xlu1 %415 }
 0x17f   :  { %3511 = vmatprep.subr.msk.mxu1 %vm211_vm1, %v208_v17 }
 0x180   :  { %3512 = vmatpush3.xpose.msk.msra.mxu1 %vm211_vm1, %v208_v17 }
 0x181   :  { %3523 = vmatprep.subr.msk.mxu1 %vm211_vm1, %v418_v16 }
 0x182   :  { %v412_v18 = vpop.permute.xlu0 %411  ;;  %v414_v20 = vpop.permute.xlu1 %413 }
 0x183   :  { %3514 = vmatmul.mubr.msk.f32.vlgmr.msra.gmra.mxu1 %vm211_vm1, %v4106_v12 }
 0x184   :  { %3524 = vmatpush3.xpose.msk.msra.mxu1 %vm211_vm1, %v418_v16  ;;  %3527 = vmatprep.mubr.msk.f32.mxu1 %vm211_vm1, %v412_v18 }
 0x185   :  { %3525 = vmatprep.subr.msk.mxu1 %vm211_vm1, %v416_v19 }
 0x188   :  { %3526 = vmatpush3.xpose.msk.msra.mxu1 %vm211_vm1, %v416_v19 }
 0x18b   :  { %3528 = vmatmul.mubr.msk.f32.vlgmr.msra.gmra.mxu1 %vm211_vm1, %v414_v20  ;;  %v202_v20 = vld [vmem:[%s4575_s4 + $0x8] sm:$0xff] }
 0x243   :  { %v3515_v22 = vpop.f32.mrf.mxu1 }
 0x244   :  { %v296_v23 = vmul.f32 0.35355338, %v3515_v22 }
 0x245   :  { %v286_v25 = vpop.f32.mrf.mxu1 }
 0x246   :  { %v298_v27 = vmul.f32 %v296_v23, %v4136_v21  ;;  %v295_v28 = vmul.f32 0.35355338, %v286_v25 }
 0x248   :  { %v297_v30 = vmul.f32 %v295_v28, %v4138_v24  ;;  %v300_v31 = vadd.f32 %v298_v27, %v4140_v26 }
 0x24a   :  { %v305_v32 = vsel %vm301_vm2, %v300_v31, -inf  ;;  %v299_v33 = vadd.f32 %v297_v30, %v4143_v29  ;;  %v201_v30 = vld [vmem:[%s4575_s4] sm:$0xff] }
 0x24b   :  { %306 = vmax.xlane.f32.xlu1 %v305_v32  ;;  %v3529_v34 = vpop.f32.mrf.mxu1  ;;  %3542 = vmatprep.subr.mxu1 %v201_v30 }
 0x24c   :  { %v503_v35 = vmul.f32 0.35355338, %v3529_v34  ;;  %v302_v36 = vsel %vm301_vm2, %v299_v33, -inf  ;;  %3543 = vmatpush3.msra.mxu1 %v201_v30 }
 0x24d   :  { %v493_v37 = vpop.f32.mrf.mxu1  ;;  %303 = vmax.xlane.f32.xlu0 %v302_v36 }
 0x24e   :  { %v502_v38 = vmul.f32 0.35355338, %v493_v37  ;;  %v505_v39 = vmul.f32 %v503_v35, %v4136_v21 }
 0x250   :  { %v504_v40 = vmul.f32 %v502_v38, %v4138_v24  ;;  %v507_v43 = vadd.f32 %v505_v39, %v4140_v26 }
 0x252   :  { %v506_v41 = vadd.f32 %v504_v40, %v4143_v29  ;;  %v511_v44 = vsel %vm301_vm2, %v507_v43, -inf }
 0x254   :  { %v508_v42 = vsel %vm301_vm2, %v506_v41, -inf }
 0x255   :  { %509 = vmax.xlane.f32.xlu0 %v508_v42 }
 0x259   :  { %512 = vmax.xlane.f32.xlu0 %v511_v44 }
 0x25c   :  { %326 = vrot.lane.b32.xlu1 %v4106_v12, %s3984_s28 }
 0x2d4   :  { %v307_v45 = vpop.xlane.xlu1 %306 }
 0x2d5   :  { %v309_v46 = vsub.f32 %v300_v31, %v307_v45 }
 0x2d6   :  { %v304_v47 = vpop.xlane.xlu0 %303 }
 0x2d7   :  { %v312_v48 = vmul.f32 1.442695, %v309_v46  ;;  %v308_v49 = vsub.f32 %v299_v33, %v304_v47 }
 0x2d8   :  { %v327_v50 = vpop.permute.xlu1 %326 }
 0x2d9   :  { %3762 = vpow2.f32 %v312_v48  ;;  %v310_v51 = vmul.f32 1.442695, %v308_v49  ;;  %3516 = vmatprep.subr.mxu0 %v327_v50 }
 0x2da   :  { %3517 = vmatpush3.msra.mxu0 %v327_v50 }
 0x2db   :  { %3764 = vpow2.f32 %v310_v51 }
 0x2de   :  { %v510_v52 = vpop.xlane.xlu0 %509 }
 0x2df   :  { %v514_v62 = vsub.f32 %v506_v41, %v510_v52 }
 0x2e1   :  { %v516_v63 = vmul.f32 1.442695, %v514_v62 }
 0x2e2   :  { %v513_v53 = vpop.xlane.xlu0 %512 }
 0x2e3   :  { %v515_v54 = vsub.f32 %v507_v43, %v513_v53 }
 0x2e5   :  { %v518_v55 = vmul.f32 1.442695, %v515_v54 }
 0x2e6   :  { %v3763_v56 = vpop.eup %3762 }
 0x2e7   :  { %3766 = vpow2.f32 %v518_v55  ;;  %v317_v57 = vsel %vm301_vm2, %v3763_v56, 0.0 }
 0x2e8   :  { %v3765_v58 = vpop.eup %3764  ;;  %318 = vadd.xlane.f32.xlu0 %v317_v57  ;;  %3768 = vpow2.f32 %v516_v63 }
 0x2e9   :  { %v314_v59 = vsel %vm301_vm2, %v3765_v58, 0.0 }
 0x2ea   :  { %315 = vadd.xlane.f32.xlu1 %v314_v59 }
 0x2f4   :  { %v3767_v60 = vpop.eup %3766 }
 0x2f5   :  { %v523_v61 = vsel %vm301_vm2, %v3767_v60, 0.0  ;;  %v3769_v0 = vpop.eup %3768 }
 0x2f6   :  { %524 = vadd.xlane.f32.xlu0 %v523_v61  ;;  %v520_v1 = vsel %vm301_vm2, %v3769_v0, 0.0 }
 0x2fb   :  { %532 = vrot.lane.b32.xlu1 %v4106_v12, %s3985_s1 }
 0x30c   :  { %324 = vrot.lane.b32.xlu0 %v4108_v14, %s3984_s28 }
 0x310   :  { %785 = vrot.lane.b32.xlu0 %v4106_v12, %s3986_s29 }
 0x314   :  { %779 = vrot.lane.b32.xlu0 %v4108_v14, %s3987_s30 }
 0x318   :  { %1074 = vrot.lane.b32.xlu0 %v4106_v12, %s3988_s7 }
 0x31c   :  { %1068 = vrot.lane.b32.xlu0 %v4108_v14, %s3989_s11 }
 0x31f   :  { %521 = vadd.xlane.f32.xlu1 %v520_v1 }
 0x330   :  { %530 = vrot.lane.b32.xlu1 %v4108_v14, %s3985_s1 }
 0x334   :  { %783 = vrot.lane.b32.xlu1 %v4108_v14, %s3986_s29 }
 0x338   :  { %781 = vrot.lane.b32.xlu1 %v4106_v12, %s3987_s30 }
 0x33c   :  { %1072 = vrot.lane.b32.xlu1 %v4108_v14, %s3988_s7 }
 0x340   :  { %1070 = vrot.lane.b32.xlu1 %v4106_v12, %s3989_s11 }
 0x371   :  { %v319_v3 = vpop.xlane.xlu0 %318 }
 0x372   :  { %3770 = vrcp.f32 %v319_v3 }
 0x373   :  { %v316_v4 = vpop.xlane.xlu1 %315 }
 0x374   :  { %3772 = vrcp.f32 %v316_v4 }
 0x377   :  { %v533_v17 = vpop.permute.xlu1 %532 }
 0x37f   :  { %v525_v6 = vpop.xlane.xlu0 %524  ;;  %v3771_v10 = vpop.eup %3770 }
 0x380   :  { %v323_v16 = vmul.f32 %v3771_v10, %v3763_v56  ;;  %3774 = vrcp.f32 %v525_v6 }
 0x381   :  { %v3773_v11 = vpop.eup %3772 }
 0x382   :  { %v322_v13 = vmul.f32 %v3773_v11, %v3765_v58 }
 0x383   :  { %v325_v15 = vpop.permute.xlu0 %324 }
 0x384   :  { %3518 = vmatprep.subr.mxu0 %v325_v15  ;;  %3520 = vmatprep.mubr.msk.f32.mxu0 %vm301_vm2, %v322_v13 }
 0x385   :  { %3519 = vmatpush3.msra.mxu0 %v325_v15 }
 0x386   :  { %3521 = vmatmul.mubr.msk.f32.vlgmr.msra.gmra.mxu0 %vm301_vm2, %v323_v16  ;;  %3530 = vmatprep.subr.mxu0 %v533_v17 }
 0x387   :  { %3531 = vmatpush3.msra.mxu0 %v533_v17  ;;  %v786_v28 = vpop.permute.xlu0 %785 }
 0x38b   :  { %v780_v33 = vpop.permute.xlu0 %779 }
 0x38d   :  { %v3775_v22 = vpop.eup %3774 }
 0x38e   :  { %v529_v27 = vmul.f32 %v3775_v22, %v3767_v60 }
 0x38f   :  { %v1075_v37 = vpop.permute.xlu0 %1074 }
 0x393   :  { %v1069_v39 = vpop.permute.xlu0 %1068 }
 0x3a8   :  { %v522_v18 = vpop.xlane.xlu1 %521 }
 0x3a9   :  { %3776 = vrcp.f32 %v522_v18 }
 0x3ac   :  { %v531_v19 = vpop.permute.xlu1 %530 }
 0x3ad   :  { %3532 = vmatprep.subr.mxu0 %v531_v19 }
 0x3ae   :  { %3533 = vmatpush3.msra.mxu0 %v531_v19 }
 0x3af   :  { %3537 = vmatprep.subr.mxu0 %v202_v20 }
 0x3b0   :  { %v784_v35 = vpop.permute.xlu1 %783 }
 0x3b4   :  { %v782_v38 = vpop.permute.xlu1 %781 }
 0x3b6   :  { %v3777_v23 = vpop.eup %3776 }
 0x3b7   :  { %v528_v25 = vmul.f32 %v3777_v23, %v3769_v0 }
 0x3b8   :  { %v1073_v40 = vpop.permute.xlu1 %1072 }
 0x3b9   :  { %3534 = vmatprep.mubr.msk.f32.mxu0 %vm301_vm2, %v528_v25 }
 0x3ba   :  { %3535 = vmatmul.mubr.msk.f32.vlgmr.msra.gmra.mxu0 %vm301_vm2, %v529_v27 }
 0x3bb   :  { %3538 = vmatpush3.msra.mxu0 %v202_v20 }
 0x3bc   :  { %3547 = vmatprep.subr.msk.mxu0 %vm211_vm1, %v786_v28  ;;  %v1071_v41 = vpop.permute.xlu1 %1070 }
 0x446   :  { %v3522_v31 = vpop.f32.mrf.mxu0 }
 0x448   :  { %v402_v32 = vpop.f32.mrf.mxu0 }
 0x449   :  { %3544 = vmatprep.mubr.msk.f32.mxu1 %vm211_vm1, %v402_v32  ;;  %v203_v32 = vld [vmem:[%s4575_s4 + $0x10] sm:$0xff] }
 0x44a   :  { %3545 = vmatmul.mubr.msk.f32.vlgmr.msra.gmra.mxu1 %vm211_vm1, %v3522_v31 }
 0x47a   :  { %v3536_v34 = vpop.f32.mrf.mxu0 }
 0x47c   :  { %v608_v36 = vpop.f32.mrf.mxu0 }
 0x47d   :  { %3539 = vmatprep.mubr.msk.f32.mxu0 %vm211_vm1, %v608_v36 }
 0x47e   :  { %3540 = vmatmul.mubr.msk.f32.vlgmr.msra.gmra.mxu0 %vm211_vm1, %v3536_v34 }
 0x47f   :  { %3548 = vmatpush3.xpose.msk.msra.mxu0 %vm211_vm1, %v786_v28  ;;  %3551 = vmatprep.mubr.msk.f32.mxu0 %vm211_vm1, %v780_v33 }
 0x480   :  { %3549 = vmatprep.subr.msk.mxu0 %vm211_vm1, %v784_v35 }
 0x483   :  { %3550 = vmatpush3.xpose.msk.msra.mxu0 %vm211_vm1, %v784_v35 }
 0x484   :  { %3566 = vmatprep.subr.msk.mxu0 %vm211_vm1, %v1075_v37 }
 0x486   :  { %3552 = vmatmul.mubr.msk.f32.vlgmr.msra.gmra.mxu0 %vm211_vm1, %v782_v38 }
 0x487   :  { %3567 = vmatpush3.xpose.msk.msra.mxu0 %vm211_vm1, %v1075_v37  ;;  %3570 = vmatprep.mubr.msk.f32.mxu0 %vm211_vm1, %v1069_v39 }
 0x488   :  { %3568 = vmatprep.subr.msk.mxu0 %vm211_vm1, %v1073_v40 }
 0x48b   :  { %3569 = vmatpush3.xpose.msk.msra.mxu0 %vm211_vm1, %v1073_v40 }
 0x48e   :  { %3571 = vmatmul.mubr.msk.f32.vlgmr.msra.gmra.mxu0 %vm211_vm1, %v1071_v41 }
 0x50a   :  { %v3546_v42 = vpop.f32.mrf.mxu1 }
 0x53e   :  { %v3541_v43 = vpop.f32.mrf.mxu0 }
 0x53f   :  { %v4210_v44 = vadd.f32 %v3546_v42, %v3541_v43  ;;  %v770_v43 = vpop.f32.mrf.mxu1 }
 0x540   :  { %v4212_v45 = vpop.f32.mrf.mxu0 }
 0x546   :  { %v3553_v46 = vpop.f32.mrf.mxu0 }
 0x547   :  { %v871_v47 = vmul.f32 0.35355338, %v3553_v46 }
 0x548   :  { %v861_v48 = vpop.f32.mrf.mxu0 }
 0x549   :  { %v873_v49 = vmul.f32 %v871_v47, %v4136_v21  ;;  %v870_v50 = vmul.f32 0.35355338, %v861_v48 }
 0x54b   :  { %v872_v51 = vmul.f32 %v870_v50, %v4138_v24  ;;  %v875_v52 = vadd.f32 %v873_v49, %v4140_v26 }
 0x54d   :  { %v879_v53 = vsel %vm301_vm2, %v875_v52, -inf  ;;  %v874_v54 = vadd.f32 %v872_v51, %v4143_v29 }
 0x54e   :  { %880 = vmax.xlane.f32.xlu1 %v879_v53  ;;  %v3572_v56 = vpop.f32.mrf.mxu0  ;;  %v204_v53 = vld [vmem:[%s4575_s4 + $0x18] sm:$0xff] }
 0x54f   :  { %v876_v55 = vsel %vm301_vm2, %v874_v54, -inf  ;;  %v1160_v19 = vmul.f32 0.35355338, %v3572_v56 }
 0x550   :  { %877 = vmax.xlane.f32.xlu0 %v876_v55  ;;  %v1150_v57 = vpop.f32.mrf.mxu0  ;;  %v771_v55 = vadd.f32 %v770_v43, %v4212_v45 }
 0x551   :  { %v1159_v58 = vmul.f32 0.35355338, %v1150_v57  ;;  %v1162_v20 = vmul.f32 %v1160_v19, %v4136_v21 }
 0x553   :  { %v1161_v59 = vmul.f32 %v1159_v58, %v4138_v24  ;;  %v1164_v25 = vadd.f32 %v1162_v20, %v4140_v26 }
 0x555   :  { %v1163_v60 = vadd.f32 %v1161_v59, %v4143_v29  ;;  %v1168_v27 = vsel %vm301_vm2, %v1164_v25, -inf }
 0x557   :  { %v1165_v61 = vsel %vm301_vm2, %v1163_v60, -inf }
 0x55f   :  { %900 = vrot.lane.b32.xlu1 %v4106_v12, %s3990_s0 }
 0x583   :  { %1166 = vmax.xlane.f32.xlu1 %v1165_v61  ;;  %v1359_v61 = vsub.s32 1, %v4098_v7 }
 0x5d7   :  { %v881_v62 = vpop.xlane.xlu1 %880 }
 0x5d8   :  { %v883_v63 = vsub.f32 %v875_v52, %v881_v62  ;;  %v1360_v62 = vrot.slane %v4101_v9, %v1359_v61 }
 0x5d9   :  { %v878_v0 = vpop.xlane.xlu0 %877 }
 0x5da   :  { %v886_v1 = vmul.f32 1.442695, %v883_v63  ;;  %v882_v3 = vsub.f32 %v874_v54, %v878_v0 }
 0x5db   :  { %v901_v4 = vpop.permute.xlu1 %900 }
 0x5dc   :  { %3778 = vpow2.f32 %v886_v1  ;;  %v884_v6 = vmul.f32 1.442695, %v882_v3  ;;  %3554 = vmatprep.subr.mxu1 %v901_v4 }
 0x5dd   :  { %3555 = vmatpush3.msra.mxu1 %v901_v4 }
 0x5de   :  { %3780 = vpow2.f32 %v884_v6 }
 0x5e9   :  { %v3779_v10 = vpop.eup %3778 }
 0x5ea   :  { %v891_v11 = vsel %vm301_vm2, %v3779_v10, 0.0 }
 0x5eb   :  { %v3781_v13 = vpop.eup %3780  ;;  %892 = vadd.xlane.f32.xlu0 %v891_v11 }
 0x5ec   :  { %v888_v15 = vsel %vm301_vm2, %v3781_v13, 0.0 }
 0x5ef   :  { %889 = vadd.xlane.f32.xlu0 %v888_v15 }
 0x605   :  { %898 = vrot.lane.b32.xlu0 %v4108_v14, %s3990_s0 }
 0x60c   :  { %v1167_v16 = vpop.xlane.xlu1 %1166 }
 0x60d   :  { %v1171_v17 = vsub.f32 %v1163_v60, %v1167_v16 }
 0x60f   :  { %v1173_v18 = vmul.f32 1.442695, %v1171_v17 }
 0x611   :  { %3782 = vpow2.f32 %v1173_v18 }
 0x61e   :  { %v3783_v22 = vpop.eup %3782 }
 0x61f   :  { %v1177_v23 = vsel %vm301_vm2, %v3783_v22, 0.0 }
 0x620   :  { %1178 = vadd.xlane.f32.xlu1 %v1177_v23 }
 0x624   :  { %1169 = vmax.xlane.f32.xlu0 %v1168_v27  ;;  %v1405_v27 = vld [vmem:[%s4576_s5 + $0x8] sm:$0xff] }
 0x631   :  { %1189 = vrot.lane.b32.xlu1 %v4106_v12, %s3991_s16 }
 0x674   :  { %v893_v28 = vpop.xlane.xlu0 %892 }
 0x675   :  { %3784 = vrcp.f32 %v893_v28  ;;  %v1404_v28 = vld [vmem:[%s4576_s5] sm:$0xff] }
 0x678   :  { %v890_v30 = vpop.xlane.xlu0 %889 }
 0x679   :  { %3786 = vrcp.f32 %v890_v30  ;;  %v1502_v30 = vld [vmem:[%s4577_s6 + $0x38] sm:$0xff] }
 0x67c   :  { %v899_v31 = vpop.permute.xlu0 %898 }
 0x67d   :  { %3556 = vmatprep.subr.mxu1 %v899_v31 }
 0x67e   :  { %3557 = vmatpush3.msra.mxu1 %v899_v31  ;;  %v1501_v31 = vld [vmem:[%s4577_s6 + $0x30] sm:$0xff] }
 0x67f   :  { %3561 = vmatprep.subr.mxu1 %v203_v32 }
 0x682   :  { %v3785_v33 = vpop.eup %3784 }
 0x683   :  { %v897_v36 = vmul.f32 %v3785_v33, %v3779_v10  ;;  %v1499_v33 = vld [vmem:[%s4577_s6 + $0x20] sm:$0xff] }
 0x686   :  { %v3787_v34 = vpop.eup %3786 }
 0x687   :  { %v896_v35 = vmul.f32 %v3787_v34, %v3781_v13 }
 0x689   :  { %3558 = vmatprep.mubr.msk.f32.mxu1 %vm301_vm2, %v896_v35 }
 0x68a   :  { %3559 = vmatmul.mubr.msk.f32.vlgmr.msra.gmra.mxu1 %vm301_vm2, %v897_v36 }
 0x68b   :  { %3562 = vmatpush3.msra.mxu1 %v203_v32  ;;  %v1500_v32 = vld [vmem:[%s4577_s6 + $0x28] sm:$0xff] }
 0x6a9   :  { %v1179_v12 = vpop.xlane.xlu1 %1178 }
 0x6ad   :  { %v1190_v37 = vpop.permute.xlu1 %1189  ;;  %v1170_v38 = vpop.xlane.xlu0 %1169 }
 0x6ae   :  { %v1172_v39 = vsub.f32 %v1164_v25, %v1170_v38  ;;  %3573 = vmatprep.subr.mxu1 %v1190_v37  ;;  %v1406_v25 = vld [vmem:[%s4576_s5 + $0x10] sm:$0xff] }
 0x6b0   :  { %v1175_v40 = vmul.f32 1.442695, %v1172_v39  ;;  %v1388_v39 = vsub.s32 2, %v4098_v7 }
 0x6b2   :  { %3788 = vpow2.f32 %v1175_v40  ;;  %v1389_v40 = vrot.slane %v4101_v9, %v1388_v39 }
 0x6b3   :  { %3790 = vrcp.f32 %v1179_v12 }
 0x6bf   :  { %v3789_v41 = vpop.eup %3788 }
 0x6c0   :  { %v1180_v42 = vsel %vm301_vm2, %v3789_v41, 0.0  ;;  %v3791_v46 = vpop.eup %3790 }
 0x6c1   :  { %1181 = vadd.xlane.f32.xlu0 %v1180_v42  ;;  %v1185_v50 = vmul.f32 %v3791_v46, %v3783_v22 }
 0x6d7   :  { %1187 = vrot.lane.b32.xlu0 %v4108_v14, %s3991_s16 }
 0x74a   :  { %v3560_v47 = vpop.f32.mrf.mxu1  ;;  %v1182_v48 = vpop.xlane.xlu0 %1181 }
 0x74b   :  { %3792 = vrcp.f32 %v1182_v48 }
 0x74c   :  { %v976_v49 = vpop.f32.mrf.mxu1 }
 0x74d   :  { %3563 = vmatprep.mubr.msk.f32.mxu1 %vm211_vm1, %v976_v49 }
 0x74e   :  { %3564 = vmatmul.mubr.msk.f32.vlgmr.msra.gmra.mxu1 %vm211_vm1, %v3560_v47  ;;  %v1188_v51 = vpop.permute.xlu0 %1187 }
 0x74f   :  { %3574 = vmatpush3.msra.mxu1 %v1190_v37  ;;  %3577 = vmatprep.mubr.msk.f32.mxu1 %vm301_vm2, %v1185_v50 }
 0x750   :  { %3575 = vmatprep.subr.mxu1 %v1188_v51 }
 0x751   :  { %3576 = vmatpush3.msra.mxu1 %v1188_v51 }
 0x752   :  { %3580 = vmatprep.subr.mxu1 %v204_v53 }
 0x758   :  { %v3793_v52 = vpop.eup %3792 }
 0x759   :  { %v1186_v14 = vmul.f32 %v3793_v52, %v3789_v41  ;;  %v1400_v41 = vsub.s32 3, %v4098_v7 }
 0x75b   :  { %3578 = vmatmul.mubr.msk.f32.vlgmr.msra.gmra.mxu1 %vm301_vm2, %v1186_v14  ;;  %v1401_v49 = vrot.slane %v4101_v9, %v1400_v41  ;;  %v1498_v14 = vld [vmem:[%s4577_s6 + $0x18] sm:$0xff] }
 0x75c   :  { %3581 = vmatpush3.msra.mxu1 %v204_v53  ;;  %v1497_v53 = vld [vmem:[%s4577_s6 + $0x10] sm:$0xff] }
 0x75d   :  { %3596 = vmatprep.subr.mxu1 %v1502_v30 }
 0x80e   :  { %v3565_v54 = vpop.f32.mrf.mxu1 }
 0x80f   :  { %v1067_v56 = vadd.f32 %v3565_v54, %v4210_v44  ;;  %v1496_v54 = vld [vmem:[%s4577_s6 + $0x8] sm:$0xff] }
 0x810   :  { %v1057_v57 = vpop.f32.mrf.mxu1 }
 0x811   :  { %v1066_v58 = vadd.f32 %v1057_v57, %v771_v55  ;;  %v1495_v55 = vld [vmem:[%s4577_s6] sm:$0xff] }
 0x81b   :  { %v3579_v59 = vpop.f32.mrf.mxu1 }
 0x81d   :  { %v1265_v60 = vpop.f32.mrf.mxu1 }
 0x81e   :  { %3582 = vmatprep.mubr.msk.f32.mxu1 %vm211_vm1, %v1265_v60 }
 0x81f   :  { %3583 = vmatmul.mubr.msk.f32.vlgmr.msra.gmra.mxu1 %vm211_vm1, %v3579_v59 }
 0x820   :  { %3597 = vmatpush3.msra.mxu1 %v1502_v30  ;;  %v3300_v30 = vld [vmem:[%s4574_s3 + $0x28] sm:$0xff] }
 0x821   :  { %3598 = vmatprep.subr.mxu1 %v1501_v31 }
 0x822   :  { %3599 = vmatpush3.msra.mxu1 %v1501_v31  ;;  %v3299_v31 = vld [vmem:[%s4574_s3 + $0x20] sm:$0xff] }
 0x823   :  { %3600 = vmatprep.subr.mxu1 %v1500_v32 }
 0x824   :  { %3601 = vmatpush3.msra.mxu1 %v1500_v32 }
 0x825   :  { %3602 = vmatprep.subr.mxu1 %v1499_v33 }
 0x826   :  { %3603 = vmatpush3.msra.mxu1 %v1499_v33 }
 0x827   :  { %3604 = vmatprep.subr.mxu1 %v1498_v14 }
 0x828   :  { %3605 = vmatpush3.msra.mxu1 %v1498_v14  ;;  %v4352_v14 = vld [vmem:[#allocation8 + $0x8] sm:$0xff] }
 0x829   :  { %3606 = vmatprep.subr.mxu1 %v1497_v53 }
 0x82a   :  { %3607 = vmatpush3.msra.mxu1 %v1497_v53  ;;  %v1639_v53 = vrot.slane %v4352_v14, %v117_v8 }
 0x82b   :  { %3608 = vmatprep.subr.mxu1 %v1496_v54 }
 0x82c   :  { %3609 = vmatpush3.msra.mxu1 %v1496_v54 }
 0x82d   :  { %3610 = vmatprep.subr.mxu1 %v1495_v55 }
 0x82e   :  { %3611 = vmatpush3.msra.mxu1 %v1495_v55 }
 0x8df   :  { %v3584_v63 = vpop.f32.mrf.mxu1 }
 0x8e0   :  { %v1356_v0 = vadd.f32 %v3584_v63, %v1067_v56  ;;  %v1410_v56 = vsub.s32 4, %v4098_v7 }
 0x8e1   :  { %v1346_v1 = vpop.f32.mrf.mxu1 }
 0x8e2   :  { %v1362_v45 = vadd.f32 %v1360_v62, %v1356_v0  ;;  %v1355_v3 = vadd.f32 %v1346_v1, %v1066_v58  ;;  %v1411_v57 = vrot.slane %v4101_v9, %v1410_v56  ;;  %v1505_v1 = vsub.s32 5, %v4098_v7 }
 0x8e4   :  { %v1361_v44 = vadd.f32 %v1360_v62, %v1355_v3  ;;  %v1364_v4 = vadd.f32 %v1362_v45, %v4094_v5  ;;  %v1506_v45 = vrot.slane %v4101_v9, %v1505_v1 }
 0x8e6   :  { %v1368_v6 = vsel %vm119_vm0, %v1364_v4, 0.0  ;;  %v1363_v10 = vadd.f32 %v1361_v44, %v4084_v2  ;;  %v1407_v2 = vld [vmem:[%s4576_s5 + $0x18] sm:$0xff] }
 0x8e7   :  { %1369 = vadd.xlane.f32.xlu0 %v1368_v6  ;;  %3585 = vmatprep.subr.mxu0 %v1407_v2 }
 0x8e8   :  { %v1365_v11 = vsel %vm119_vm0, %v1363_v10, 0.0  ;;  %3586 = vmatpush3.msra.mxu0 %v1407_v2 }
 0x8e9   :  { %1366 = vadd.xlane.f32.xlu1 %v1365_v11  ;;  %3587 = vmatprep.subr.mxu0 %v1406_v25 }
 0x8ea   :  { %3588 = vmatpush3.msra.mxu0 %v1406_v25 }
 0x8eb   :  { %3589 = vmatprep.subr.mxu0 %v1405_v27 }
 0x8ec   :  { %3590 = vmatpush3.msra.mxu0 %v1405_v27  ;;  %v3302_v27 = vld [vmem:[%s4574_s3 + $0x38] sm:$0xff] }
 0x8ed   :  { %3591 = vmatprep.subr.mxu0 %v1404_v28 }
 0x8ee   :  { %3592 = vmatpush3.msra.mxu0 %v1404_v28  ;;  %v3301_v28 = vld [vmem:[%s4574_s3 + $0x30] sm:$0xff] }
 0x8ef   :  { %3615 = vmatprep.subr.mxu0 %v3302_v27 }
 0x970   :  { %v1370_v13 = vpop.xlane.xlu0 %1369 }
 0x971   :  { %v1373_v15 = vmul.f32 0.03125, %v1370_v13 }
 0x972   :  { %v1367_v16 = vpop.xlane.xlu1 %1366 }
 0x973   :  { %v1375_v17 = vsub.f32 %v1364_v4, %v1373_v15  ;;  %v1372_v18 = vmul.f32 0.03125, %v1367_v16 }
 0x975   :  { %v1374_v19 = vsub.f32 %v1363_v10, %v1372_v18  ;;  %v1377_v20 = vmul.f32 %v1375_v17, %v1375_v17  ;;  %v1391_v43 = vmul.f32 %v1389_v40, %v1375_v17 }
 0x977   :  { %v1381_v22 = vsel %vm119_vm0, %v1377_v20, 0.0  ;;  %v1376_v23 = vmul.f32 %v1374_v19, %v1374_v19  ;;  %v1390_v46 = vmul.f32 %v1389_v40, %v1374_v19  ;;  %v1625_v40 = vsub.s32 7, %v4098_v7 }
 0x978   :  { %1382 = vadd.xlane.f32.xlu0 %v1381_v22 }
 0x979   :  { %v1378_v5 = vsel %vm119_vm0, %v1376_v23, 0.0 }
 0x97a   :  { %1379 = vadd.xlane.f32.xlu1 %v1378_v5 }
 0xa01   :  { %v1383_v34 = vpop.xlane.xlu0 %1382 }
 0xa02   :  { %v1385_v35 = vmul.f32 0.03125, %v1383_v34 }
 0xa03   :  { %v1380_v36 = vpop.xlane.xlu1 %1379 }
 0xa04   :  { %v1393_v12 = vadd.f32 1e-12, %v1385_v35  ;;  %v1384_v37 = vmul.f32 0.03125, %v1380_v36 }
 0xa06   :  { %3794 = vrsqrt.f32 %v1393_v12  ;;  %v1392_v38 = vadd.f32 1e-12, %v1384_v37  ;;  %v1613_v37 = vsub.s32 6, %v4098_v7 }
 0xa08   :  { %3796 = vrsqrt.f32 %v1392_v38  ;;  %v1614_v38 = vrot.slane %v4101_v9, %v1613_v37 }
 0xa13   :  { %v3795_v42 = vpop.eup %3794 }
 0xa14   :  { %v1397_v48 = vmul.f32 %v3795_v42, %v1391_v43 }
 0xa15   :  { %v3797_v47 = vpop.eup %3796 }
 0xa16   :  { %v1396_v50 = vmul.f32 %v3797_v47, %v1390_v46  ;;  %v1403_v52 = vadd.f32 %v1401_v49, %v1397_v48 }
 0xa18   :  { %v1402_v51 = vadd.f32 %v1401_v49, %v1396_v50  ;;  %v1626_v49 = vrot.slane %v4101_v9, %v1625_v40 }
 0xa1a   :  { %3593 = vmatprep.mubr.msk.f32.mxu0 %vm119_vm0, %v1402_v51 }
 0xa1b   :  { %3594 = vmatmul.mubr.msk.f32.vlgmr.msra.gmra.mxu0 %vm119_vm0, %v1403_v52 }
 0xa1c   :  { %3616 = vmatpush3.msra.mxu0 %v3302_v27 }
 0xa1d   :  { %3617 = vmatprep.subr.mxu0 %v3301_v28 }
 0xa1e   :  { %3618 = vmatpush3.msra.mxu0 %v3301_v28 }
 0xa1f   :  { %3619 = vmatprep.subr.mxu0 %v3300_v30 }
 0xa20   :  { %3620 = vmatpush3.msra.mxu0 %v3300_v30 }
 0xa21   :  { %3621 = vmatprep.subr.mxu0 %v3299_v31 }
 0xa22   :  { %3622 = vmatpush3.msra.mxu0 %v3299_v31 }
 0xadb   :  { %v3595_v58 = vpop.f32.mrf.mxu0 }
 0xadc   :  { %v1490_v59 = vadd.f32 %v3595_v58, %v1411_v57 }
 0xadd   :  { %v1484_v60 = vpop.f32.mrf.mxu0 }
 0xade   :  { %v1485_v62 = vadd.f32 %v1484_v60, %v1411_v57  ;;  %v1494_v0 = vmax.f32 %v1490_v59, 0.0 }
 0xae0   :  { %v1493_v63 = vmax.f32 %v1485_v62, 0.0 }
 0xae2   :  { %3612 = vmatprep.mubr.msk.f32.mxu1 %vm1507_vm3, %v1493_v63 }
 0xae3   :  { %3613 = vmatmul.mubr.msk.f32.vlgmr.msra.gmra.mxu1 %vm1507_vm3, %v1494_v0 }
 0xba3   :  { %v3614_v3 = vpop.f32.mrf.mxu1 }
 0xba4   :  { %v1586_v44 = vadd.f32 %v3614_v3, %v1506_v45 }
 0xba5   :  { %v1580_v4 = vpop.f32.mrf.mxu1 }
 0xba6   :  { %v1581_v6 = vadd.f32 %v1580_v4, %v1506_v45  ;;  %v1590_v10 = vadd.f32 %v1586_v44, %v1403_v52 }
 0xba8   :  { %v1594_v11 = vsel %vm119_vm0, %v1590_v10, 0.0  ;;  %v1589_v13 = vadd.f32 %v1581_v6, %v1402_v51 }
 0xba9   :  { %1595 = vadd.xlane.f32.xlu0 %v1594_v11 }
 0xbaa   :  { %v1591_v15 = vsel %vm119_vm0, %v1589_v13, 0.0 }
 0xbab   :  { %1592 = vadd.xlane.f32.xlu1 %v1591_v15 }
 0xc32   :  { %v1596_v16 = vpop.xlane.xlu0 %1595 }
 0xc33   :  { %v1598_v17 = vmul.f32 0.03125, %v1596_v16 }
 0xc34   :  { %v1593_v18 = vpop.xlane.xlu1 %1592 }
 0xc35   :  { %v1600_v19 = vsub.f32 %v1590_v10, %v1598_v17  ;;  %v1597_v20 = vmul.f32 0.03125, %v1593_v18 }
 0xc37   :  { %v1599_v22 = vsub.f32 %v1589_v13, %v1597_v20  ;;  %v1602_v23 = vmul.f32 %v1600_v19, %v1600_v19  ;;  %v1616_v43 = vmul.f32 %v1614_v38, %v1600_v19 }
 0xc39   :  { %v1606_v5 = vsel %vm119_vm0, %v1602_v23, 0.0  ;;  %v1601_v2 = vmul.f32 %v1599_v22, %v1599_v22  ;;  %v1615_v46 = vmul.f32 %v1614_v38, %v1599_v22 }
 0xc3a   :  { %1607 = vadd.xlane.f32.xlu0 %v1606_v5 }
 0xc3b   :  { %v1603_v25 = vsel %vm119_vm0, %v1601_v2, 0.0 }
 0xc3c   :  { %1604 = vadd.xlane.f32.xlu1 %v1603_v25 }
 0xcc3   :  { %v1608_v32 = vpop.xlane.xlu0 %1607 }
 0xcc4   :  { %v1610_v33 = vmul.f32 0.03125, %v1608_v32 }
 0xcc5   :  { %v1605_v34 = vpop.xlane.xlu1 %1604 }
 0xcc6   :  { %v1618_v35 = vadd.f32 1e-12, %v1610_v33  ;;  %v1609_v36 = vmul.f32 0.03125, %v1605_v34 }
 0xcc8   :  { %3798 = vrsqrt.f32 %v1618_v35  ;;  %v1617_v12 = vadd.f32 1e-12, %v1609_v36  ;;  %v3305_v36 = vld [vmem:[%s4575_s4 + $0x20] sm:$0xff] }
 0xcca   :  { %3800 = vrsqrt.f32 %v1617_v12 }
 0xcd5   :  { %v3799_v42 = vpop.eup %3798 }
 0xcd6   :  { %v1622_v48 = vmul.f32 %v3799_v42, %v1616_v43 }
 0xcd7   :  { %v3801_v47 = vpop.eup %3800 }
 0xcd8   :  { %v1621_v50 = vmul.f32 %v3801_v47, %v1615_v46  ;;  %v4346_v52 = vadd.f32 %v1626_v49, %v1622_v48 }
 0xcda   :  { %v4344_v51 = vadd.f32 %v1626_v49, %v1621_v50 }
 0xcdc   :  { %3623 = vmatprep.mubr.msk.f32.mxu0 %vm119_vm0, %v4344_v51 }
 0xcdd   :  { %3624 = vmatmul.mubr.msk.f32.vlgmr.msra.gmra.mxu0 %vm119_vm0, %v4346_v52 }
 0xd9d   :  { %v3625_v54 = vpop.f32.mrf.mxu0 }
 0xd9e   :  { %v4357_v55 = vadd.f32 %v3625_v54, %v1639_v53 }
 0xd9f   :  { %v1712_v9 = vpop.f32.mrf.mxu0 }
 0xda0   :  { %v4359_v57 = vadd.f32 %v1712_v9, %v1639_v53  ;;  %1730 = vrot.lane.b32.xlu1 %v4357_v55, %s3982_s26 }
 0xda2   :  { %1728 = vrot.lane.b32.xlu0 %v4359_v57, %s3982_s26  ;;  %3630 = vmatprep.mubr.msk.f32.mxu0 %vm211_vm1, %v4359_v57 }
 0xe12   :  { %v1731_v58 = vpop.permute.xlu1 %1730 }
 0xe13   :  { %3626 = vmatprep.subr.msk.mxu0 %vm211_vm1, %v1731_v58 }
 0xe14   :  { %3627 = vmatpush3.xpose.msk.msra.mxu0 %vm211_vm1, %v1731_v58  ;;  %v1729_v8 = vpop.permute.xlu0 %1728 }
 0xe15   :  { %3628 = vmatprep.subr.msk.mxu0 %vm211_vm1, %v1729_v8 }
 0xe18   :  { %3629 = vmatpush3.xpose.msk.msra.mxu0 %vm211_vm1, %v1729_v8 }
 0xe1b   :  { %3631 = vmatmul.mubr.msk.f32.vlgmr.msra.gmra.mxu0 %vm211_vm1, %v4357_v55 }
 0xedb   :  { %v3632_v59 = vpop.f32.mrf.mxu0 }
 0xedc   :  { %v1816_v60 = vmul.f32 0.35355338, %v3632_v59 }
 0xedd   :  { %v1806_v62 = vpop.f32.mrf.mxu0 }
 0xede   :  { %v1818_v63 = vmul.f32 %v1816_v60, %v4136_v21  ;;  %v1815_v0 = vmul.f32 0.35355338, %v1806_v62 }
 0xee0   :  { %v1817_v45 = vmul.f32 %v1815_v0, %v4138_v24  ;;  %v1820_v3 = vadd.f32 %v1818_v63, %v4140_v26 }
 0xee2   :  { %v1824_v44 = vsel %vm301_vm2, %v1820_v3, -inf  ;;  %v1819_v4 = vadd.f32 %v1817_v45, %v4143_v29 }
 0xee3   :  { %1825 = vmax.xlane.f32.xlu0 %v1824_v44 }
 0xee4   :  { %v1821_v6 = vsel %vm301_vm2, %v1819_v4, -inf }
 0xee5   :  { %1822 = vmax.xlane.f32.xlu1 %v1821_v6 }
 0xef6   :  { %1845 = vrot.lane.b32.xlu1 %v4357_v55, %s3984_s28 }
 0xefa   :  { %1936 = vrot.lane.b32.xlu1 %v4357_v55, %s3981_s25 }
 0xefe   :  { %1934 = vrot.lane.b32.xlu1 %v4359_v57, %s3981_s25 }
 0xf6c   :  { %v1826_v10 = vpop.xlane.xlu0 %1825 }
 0xf6d   :  { %v1828_v11 = vsub.f32 %v1820_v3, %v1826_v10 }
 0xf6e   :  { %v1823_v13 = vpop.xlane.xlu1 %1822 }
 0xf6f   :  { %v1831_v15 = vmul.f32 1.442695, %v1828_v11  ;;  %v1827_v16 = vsub.f32 %v1819_v4, %v1823_v13  ;;  %v3306_v4 = vld [vmem:[%s4575_s4 + $0x28] sm:$0xff] }
 0xf71   :  { %3802 = vpow2.f32 %v1831_v15  ;;  %v1829_v17 = vmul.f32 1.442695, %v1827_v16 }
 0xf72   :  { %v1846_v18 = vpop.permute.xlu1 %1845 }
 0xf73   :  { %3804 = vpow2.f32 %v1829_v17  ;;  %3633 = vmatprep.subr.mxu1 %v1846_v18 }
 0xf74   :  { %3634 = vmatpush3.msra.mxu1 %v1846_v18 }
 0xf76   :  { %v1937_v5 = vpop.permute.xlu1 %1936 }
 0xf7a   :  { %v1935_v2 = vpop.permute.xlu1 %1934 }
 0xf7e   :  { %v3803_v19 = vpop.eup %3802 }
 0xf7f   :  { %v1836_v20 = vsel %vm301_vm2, %v3803_v19, 0.0 }
 0xf80   :  { %v3805_v22 = vpop.eup %3804  ;;  %1837 = vadd.xlane.f32.xlu0 %v1836_v20 }
 0xf81   :  { %v1833_v23 = vsel %vm301_vm2, %v3805_v22, 0.0 }
 0xf82   :  { %1834 = vadd.xlane.f32.xlu1 %v1833_v23 }
 0xf93   :  { %1932 = vrot.lane.b32.xlu1 %v4357_v55, %s3983_s27 }
 0xf96   :  { %1843 = vrot.lane.b32.xlu0 %v4359_v57, %s3984_s28 }
 0xf9a   :  { %1930 = vrot.lane.b32.xlu0 %v4359_v57, %s3983_s27 }
0x1009   :  { %v1838_v25 = vpop.xlane.xlu0 %1837 }
0x100a   :  { %3806 = vrcp.f32 %v1838_v25 }
0x100b   :  { %v1835_v27 = vpop.xlane.xlu1 %1834 }
0x100c   :  { %3808 = vrcp.f32 %v1835_v27 }
0x100d   :  { %v1844_v28 = vpop.permute.xlu0 %1843 }
0x100e   :  { %3635 = vmatprep.subr.mxu1 %v1844_v28 }
0x100f   :  { %3636 = vmatpush3.msra.mxu1 %v1844_v28  ;;  %v1933_v35 = vpop.permute.xlu1 %1932 }
0x1010   :  { %3640 = vmatprep.subr.msk.mxu1 %vm211_vm1, %v1937_v5 }
0x1011   :  { %v1931_v34 = vpop.permute.xlu0 %1930 }
0x1017   :  { %v3807_v30 = vpop.eup %3806 }
0x1018   :  { %v1842_v33 = vmul.f32 %v3807_v30, %v3803_v19 }
0x1019   :  { %v3809_v31 = vpop.eup %3808 }
0x101a   :  { %v1841_v32 = vmul.f32 %v3809_v31, %v3805_v22 }
0x101c   :  { %3637 = vmatprep.mubr.msk.f32.mxu1 %vm301_vm2, %v1841_v32  ;;  %v3842_v32 = vld [vmem:[#allocation5 + $0x8] sm:$0xff] }
0x101d   :  { %3638 = vmatmul.mubr.msk.f32.vlgmr.msra.gmra.mxu1 %vm301_vm2, %v1842_v33 }
0x101e   :  { %3641 = vmatpush3.xpose.msk.msra.mxu1 %vm211_vm1, %v1937_v5  ;;  %3644 = vmatprep.mubr.msk.f32.mxu1 %vm211_vm1, %v1931_v34 }
0x101f   :  { %3642 = vmatprep.subr.msk.mxu1 %vm211_vm1, %v1935_v2 }
0x1022   :  { %3643 = vmatpush3.xpose.msk.msra.mxu1 %vm211_vm1, %v1935_v2 }
0x1023   :  { %3659 = vmatprep.subr.mxu1 %v3305_v36 }
0x1025   :  { %3645 = vmatmul.mubr.msk.f32.vlgmr.msra.gmra.mxu1 %vm211_vm1, %v1933_v35  ;;  %v3843_v35 = vld [vmem:[#allocation5] sm:$0xff] }
0x1026   :  { %3660 = vmatpush3.msra.mxu1 %v3305_v36 }
0x10dd   :  { %v3639_v12 = vpop.f32.mrf.mxu1 }
0x10df   :  { %v1921_v38 = vpop.f32.mrf.mxu1 }
0x10e0   :  { %3661 = vmatprep.mubr.msk.f32.mxu1 %vm211_vm1, %v1921_v38 }
0x10e1   :  { %3662 = vmatmul.mubr.msk.f32.vlgmr.msra.gmra.mxu1 %vm211_vm1, %v3639_v12  ;;  %v3844_v12 = vld [vmem:[#allocation7 + $0x8] sm:$0xff] }
0x10e5   :  { %v3646_v42 = vpop.f32.mrf.mxu1 }
0x10e6   :  { %v2022_v43 = vmul.f32 0.35355338, %v3646_v42 }
0x10e7   :  { %v2012_v46 = vpop.f32.mrf.mxu1 }
0x10e8   :  { %v2024_v47 = vmul.f32 %v2022_v43, %v4136_v21  ;;  %v2021_v48 = vmul.f32 0.35355338, %v2012_v46  ;;  %v3845_v43 = vld [vmem:[#allocation7] sm:$0xff] }
0x10ea   :  { %v2023_v49 = vmul.f32 %v2021_v48, %v4138_v24  ;;  %v2026_v50 = vadd.f32 %v2024_v47, %v4140_v26 }
0x10ec   :  { %v2030_v53 = vsel %vm301_vm2, %v2026_v50, -inf  ;;  %v2025_v54 = vadd.f32 %v2023_v49, %v4143_v29 }
0x10ed   :  { %2031 = vmax.xlane.f32.xlu1 %v2030_v53 }
0x10ee   :  { %v2027_v9 = vsel %vm301_vm2, %v2025_v54, -inf }
0x10ef   :  { %2028 = vmax.xlane.f32.xlu0 %v2027_v9 }
0x10fe   :  { %2051 = vrot.lane.b32.xlu1 %v4357_v55, %s3985_s1 }
0x1102   :  { %2304 = vrot.lane.b32.xlu1 %v4357_v55, %s3986_s29 }
0x1106   :  { %2302 = vrot.lane.b32.xlu1 %v4359_v57, %s3986_s29 }
0x110a   :  { %2300 = vrot.lane.b32.xlu1 %v4357_v55, %s3987_s30 }
0x110e   :  { %2591 = vrot.lane.b32.xlu1 %v4359_v57, %s3988_s7 }
0x1112   :  { %2589 = vrot.lane.b32.xlu1 %v4357_v55, %s3989_s11 }
0x1176   :  { %v2032_v21 = vpop.xlane.xlu1 %2031 }
0x1177   :  { %v2034_v24 = vsub.f32 %v2026_v50, %v2032_v21 }
0x1178   :  { %v2029_v26 = vpop.xlane.xlu0 %2028 }
0x1179   :  { %v2037_v29 = vmul.f32 1.442695, %v2034_v24  ;;  %v2033_v58 = vsub.f32 %v2025_v54, %v2029_v26 }
0x117a   :  { %v2052_v8 = vpop.permute.xlu1 %2051 }
0x117b   :  { %3810 = vpow2.f32 %v2037_v29  ;;  %v2035_v59 = vmul.f32 1.442695, %v2033_v58  ;;  %3647 = vmatprep.subr.mxu0 %v2052_v8 }
0x117c   :  { %3648 = vmatpush3.msra.mxu0 %v2052_v8 }
0x117d   :  { %3812 = vpow2.f32 %v2035_v59 }
0x117e   :  { %v2305_v15 = vpop.permute.xlu1 %2304 }
0x1182   :  { %v2303_v18 = vpop.permute.xlu1 %2302 }
0x1186   :  { %v2301_v22 = vpop.permute.xlu1 %2300 }
0x1188   :  { %v3811_v60 = vpop.eup %3810 }
0x1189   :  { %v2042_v62 = vsel %vm301_vm2, %v3811_v60, 0.0 }
0x118a   :  { %v3813_v63 = vpop.eup %3812  ;;  %2043 = vadd.xlane.f32.xlu0 %v2042_v62  ;;  %v2592_v5 = vpop.permute.xlu1 %2591 }
0x118b   :  { %v2039_v0 = vsel %vm301_vm2, %v3813_v63, 0.0 }
0x118e   :  { %2040 = vadd.xlane.f32.xlu0 %v2039_v0  ;;  %v2590_v2 = vpop.permute.xlu1 %2589 }
0x11a4   :  { %2049 = vrot.lane.b32.xlu0 %v4359_v57, %s3985_s1 }
0x11a8   :  { %2298 = vrot.lane.b32.xlu0 %v4359_v57, %s3987_s30  ;;  %s3992_s30 = smov [#allocation11]  }
0x11ac   :  { %2593 = vrot.lane.b32.xlu0 %v4357_v55, %s3988_s7 }
0x11b0   :  { %2587 = vrot.lane.b32.xlu0 %v4359_v57, %s3989_s11 }
0x1213   :  { %v2044_v45 = vpop.xlane.xlu0 %2043 }
0x1214   :  { %3814 = vrcp.f32 %v2044_v45 }
0x1217   :  { %v2041_v3 = vpop.xlane.xlu0 %2040 }
0x1218   :  { %3816 = vrcp.f32 %v2041_v3 }
0x121b   :  { %v2050_v44 = vpop.permute.xlu0 %2049 }
0x121c   :  { %3649 = vmatprep.subr.mxu0 %v2050_v44 }
0x121d   :  { %3650 = vmatpush3.msra.mxu0 %v2050_v44 }
0x121e   :  { %3654 = vmatprep.subr.mxu0 %v3306_v4 }
0x121f   :  { %v2299_v16 = vpop.permute.xlu0 %2298 }
0x1221   :  { %v3815_v6 = vpop.eup %3814 }
0x1222   :  { %v2048_v13 = vmul.f32 %v3815_v6, %v3811_v60 }
0x1223   :  { %v2594_v20 = vpop.permute.xlu0 %2593 }
0x1225   :  { %v3817_v10 = vpop.eup %3816 }
0x1226   :  { %v2047_v11 = vmul.f32 %v3817_v10, %v3813_v63 }
0x1227   :  { %v2588_v23 = vpop.permute.xlu0 %2587 }
0x1228   :  { %3651 = vmatprep.mubr.msk.f32.mxu0 %vm301_vm2, %v2047_v11 }
0x1229   :  { %3652 = vmatmul.mubr.msk.f32.vlgmr.msra.gmra.mxu0 %vm301_vm2, %v2048_v13 }
0x122a   :  { %3655 = vmatpush3.msra.mxu0 %v3306_v4 }
0x122b   :  { %3664 = vmatprep.subr.msk.mxu0 %vm211_vm1, %v2305_v15 }
0x12e9   :  { %v3653_v17 = vpop.f32.mrf.mxu0 }
0x12eb   :  { %v2127_v19 = vpop.f32.mrf.mxu0 }
0x12ec   :  { %3656 = vmatprep.mubr.msk.f32.mxu0 %vm211_vm1, %v2127_v19  ;;  %v3307_v19 = vld [vmem:[%s4575_s4 + $0x30] sm:$0xff] }
0x12ed   :  { %3657 = vmatmul.mubr.msk.f32.vlgmr.msra.gmra.mxu0 %vm211_vm1, %v3653_v17 }
0x12ee   :  { %3665 = vmatpush3.xpose.msk.msra.mxu0 %vm211_vm1, %v2305_v15  ;;  %3668 = vmatprep.mubr.msk.f32.mxu0 %vm211_vm1, %v2299_v16 }
0x12ef   :  { %3666 = vmatprep.subr.msk.mxu0 %vm211_vm1, %v2303_v18 }
0x12f2   :  { %3667 = vmatpush3.xpose.msk.msra.mxu0 %vm211_vm1, %v2303_v18 }
0x12f3   :  { %3683 = vmatprep.subr.msk.mxu0 %vm211_vm1, %v2594_v20 }
0x12f5   :  { %3669 = vmatmul.mubr.msk.f32.vlgmr.msra.gmra.mxu0 %vm211_vm1, %v2301_v22 }
0x12f6   :  { %3684 = vmatpush3.xpose.msk.msra.mxu0 %vm211_vm1, %v2594_v20  ;;  %3687 = vmatprep.mubr.msk.f32.mxu0 %vm211_vm1, %v2588_v23 }
0x12f7   :  { %3685 = vmatprep.subr.msk.mxu0 %vm211_vm1, %v2592_v5 }
0x12fa   :  { %3686 = vmatpush3.xpose.msk.msra.mxu0 %vm211_vm1, %v2592_v5 }
0x12fd   :  { %3688 = vmatmul.mubr.msk.f32.vlgmr.msra.gmra.mxu0 %vm211_vm1, %v2590_v2 }
0x13ad   :  { %v4453_v25 = vpop.f32.mrf.mxu0 }
0x13af   :  { %v4455_v27 = vpop.f32.mrf.mxu0 }
0x13b5   :  { %v3670_v28 = vpop.f32.mrf.mxu0 }
0x13b6   :  { %v2390_v30 = vmul.f32 0.35355338, %v3670_v28 }
0x13b7   :  { %v2380_v31 = vpop.f32.mrf.mxu0 }
0x13b8   :  { %v2392_v33 = vmul.f32 %v3842_v32, %v2390_v30  ;;  %v2389_v34 = vmul.f32 0.35355338, %v2380_v31 }
0x13ba   :  { %v2391_v36 = vmul.f32 %v3843_v35, %v2389_v34  ;;  %v2394_v38 = vadd.f32 %v3844_v12, %v2392_v33  ;;  %v3663_v34 = vpop.f32.mrf.mxu1 }
0x13bc   :  { %v2398_v42 = vsel %vm301_vm2, %v2394_v38, -inf  ;;  %v2393_v46 = vadd.f32 %v3845_v43, %v2391_v36 }
0x13bd   :  { %2399 = vmax.xlane.f32.xlu1 %v2398_v42  ;;  %v3689_v48 = vpop.f32.mrf.mxu0 }
0x13be   :  { %v2395_v47 = vsel %vm301_vm2, %v2393_v46, -inf  ;;  %v2679_v4 = vmul.f32 0.35355338, %v3689_v48  ;;  %v3308_v48 = vld [vmem:[%s4575_s4 + $0x38] sm:$0xff]  ;;  %s3247_s4 = sshll.u32 %s3992_s30, 4  ;;  %s3248_s4 = int_to_ptr.vmem [resolvable:$true] %s3247_s4 }
0x13bf   :  { %2396 = vmax.xlane.f32.xlu0 %v2395_v47  ;;  %v2669_v49 = vpop.f32.mrf.mxu0  ;;  %s3946_s7 = scalar_lea.vmem %s3248_s4, 256  ;;  %p3951_p12 = scmp.lt.s32.totalorder %s3248_s4, %s3248_s4 }
0x13c0   :  { %v2678_v50 = vmul.f32 0.35355338, %v2669_v49  ;;  %v2681_v6 = vmul.f32 %v3842_v32, %v2679_v4  ;;  %v2295_v49 = vadd.f32 %v3663_v34, %v4453_v25  ;;  %p3947_p11 = scmp.ne.s32.totalorder %s3248_s4, %s3946_s7  ;;  %p3952_p13 = scmp.lt.s32.totalorder %s3946_s7, %s3946_s7 }
0x13c2   :  { %v2680_v53 = vmul.f32 %v3843_v35, %v2678_v50  ;;  %v2683_v13 = vadd.f32 %v3844_v12, %v2681_v6  ;;  %v2289_v35 = vpop.f32.mrf.mxu1  ;;  %p3953_p0 = por %p3952_p13, %p3951_p12 }
0x13c4   :  { %v2682_v54 = vadd.f32 %v3845_v43, %v2680_v53  ;;  %v2687_v15 = vsel %vm301_vm2, %v2683_v13, -inf  ;;  %v2290_v53 = vadd.f32 %v2289_v35, %v4455_v27  ;;  %p3954_p1 = pnand %p3953_p0, %p3947_p11 }
0x13c6   :  { %v2684_v9 = vsel %vm301_vm2, %v2682_v54, -inf }
0x13ce   :  { %2419 = vrot.lane.b32.xlu1 %v4357_v55, %s3990_s0 }
0x13f2   :  { %2685 = vmax.xlane.f32.xlu1 %v2684_v9 }
0x1446   :  { %v2400_v21 = vpop.xlane.xlu1 %2399 }
0x1447   :  { %v2402_v24 = vsub.f32 %v2394_v38, %v2400_v21 }
0x1448   :  { %v2397_v26 = vpop.xlane.xlu0 %2396 }
0x1449   :  { %v2405_v29 = vmul.f32 1.442695, %v2402_v24  ;;  %v2401_v58 = vsub.f32 %v2393_v46, %v2397_v26 }
0x144a   :  { %v2420_v8 = vpop.permute.xlu1 %2419 }
0x144b   :  { %3818 = vpow2.f32 %v2405_v29  ;;  %v2403_v59 = vmul.f32 1.442695, %v2401_v58  ;;  %3671 = vmatprep.subr.mxu1 %v2420_v8  ;;  %v2879_v29 = vrot.slane %v4352_v14, %v1359_v61 }
0x144c   :  { %3672 = vmatpush3.msra.mxu1 %v2420_v8 }
0x144d   :  { %3820 = vpow2.f32 %v2403_v59 }
0x1458   :  { %v3819_v60 = vpop.eup %3818 }
0x1459   :  { %v2410_v62 = vsel %vm301_vm2, %v3819_v60, 0.0 }
0x145a   :  { %v3821_v63 = vpop.eup %3820  ;;  %2411 = vadd.xlane.f32.xlu0 %v2410_v62 }
0x145b   :  { %v2407_v0 = vsel %vm301_vm2, %v3821_v63, 0.0 }
0x145e   :  { %2408 = vadd.xlane.f32.xlu0 %v2407_v0 }
0x1474   :  { %2417 = vrot.lane.b32.xlu0 %v4359_v57, %s3990_s0 }
0x147b   :  { %v2686_v45 = vpop.xlane.xlu1 %2685 }
0x147c   :  { %v2690_v3 = vsub.f32 %v2682_v54, %v2686_v45 }
0x147e   :  { %v2692_v44 = vmul.f32 1.442695, %v2690_v3 }
0x1480   :  { %3822 = vpow2.f32 %v2692_v44 }
0x148d   :  { %v3823_v10 = vpop.eup %3822 }
0x148e   :  { %v2696_v11 = vsel %vm301_vm2, %v3823_v10, 0.0 }
0x148f   :  { %2697 = vadd.xlane.f32.xlu1 %v2696_v11 }
0x1493   :  { %2688 = vmax.xlane.f32.xlu0 %v2687_v15 }
0x14a0   :  { %2708 = vrot.lane.b32.xlu1 %v4357_v55, %s3991_s16 }
0x14e3   :  { %v2412_v16 = vpop.xlane.xlu0 %2411 }
0x14e4   :  { %3824 = vrcp.f32 %v2412_v16  ;;  %v3343_v16 = vld [vmem:[%s4576_s5 + $0x30] sm:$0xff] }
0x14e7   :  { %v2409_v17 = vpop.xlane.xlu0 %2408 }
0x14e8   :  { %3826 = vrcp.f32 %v2409_v17  ;;  %v3342_v17 = vld [vmem:[%s4576_s5 + $0x28] sm:$0xff] }
0x14eb   :  { %v2418_v18 = vpop.permute.xlu0 %2417 }
0x14ec   :  { %3673 = vmatprep.subr.mxu1 %v2418_v18 }
0x14ed   :  { %3674 = vmatpush3.msra.mxu1 %v2418_v18  ;;  %v3341_v18 = vld [vmem:[%s4576_s5 + $0x20] sm:$0xff] }
0x14ee   :  { %3678 = vmatprep.subr.mxu1 %v3307_v19 }
0x14f1   :  { %v3825_v20 = vpop.eup %3824 }
0x14f2   :  { %v2416_v5 = vmul.f32 %v3825_v20, %v3819_v60  ;;  %v3353_v20 = vld [vmem:[%s4577_s6 + $0x70] sm:$0xff] }
0x14f5   :  { %v3827_v22 = vpop.eup %3826 }
0x14f6   :  { %v2415_v23 = vmul.f32 %v3827_v22, %v3821_v63  ;;  %v3352_v22 = vld [vmem:[%s4577_s6 + $0x68] sm:$0xff] }
0x14f8   :  { %3675 = vmatprep.mubr.msk.f32.mxu1 %vm301_vm2, %v2415_v23  ;;  %v3351_v23 = vld [vmem:[%s4577_s6 + $0x60] sm:$0xff] }
0x14f9   :  { %3676 = vmatmul.mubr.msk.f32.vlgmr.msra.gmra.mxu1 %vm301_vm2, %v2416_v5 }
0x14fa   :  { %3679 = vmatpush3.msra.mxu1 %v3307_v19  ;;  %v3354_v19 = vld [vmem:[%s4577_s6 + $0x78] sm:$0xff] }
0x1518   :  { %v2698_v55 = vpop.xlane.xlu1 %2697 }
0x151c   :  { %v2709_v2 = vpop.permute.xlu1 %2708  ;;  %v2689_v28 = vpop.xlane.xlu0 %2688 }
0x151d   :  { %v2691_v30 = vsub.f32 %v2683_v13, %v2689_v28  ;;  %3690 = vmatprep.subr.mxu1 %v2709_v2 }
0x151f   :  { %v2694_v31 = vmul.f32 1.442695, %v2691_v30 }
0x1521   :  { %3828 = vpow2.f32 %v2694_v31 }
0x1522   :  { %3830 = vrcp.f32 %v2698_v55 }
0x152e   :  { %v3829_v32 = vpop.eup %3828 }
0x152f   :  { %v2699_v33 = vsel %vm301_vm2, %v3829_v32, 0.0  ;;  %v3831_v36 = vpop.eup %3830 }
0x1530   :  { %2700 = vadd.xlane.f32.xlu0 %v2699_v33  ;;  %v2704_v43 = vmul.f32 %v3831_v36, %v3823_v10 }
0x1546   :  { %2706 = vrot.lane.b32.xlu0 %v4359_v57, %s3991_s16 }
0x15b9   :  { %v3677_v12 = vpop.f32.mrf.mxu1  ;;  %v2701_v38 = vpop.xlane.xlu0 %2700 }
0x15ba   :  { %3832 = vrcp.f32 %v2701_v38  ;;  %v2919_v38 = vrot.slane %v4352_v14, %v1400_v41  ;;  %v3348_v41 = vld [vmem:[%s4577_s6 + $0x48] sm:$0xff] }
0x15bb   :  { %v2495_v42 = vpop.f32.mrf.mxu1 }
0x15bc   :  { %3680 = vmatprep.mubr.msk.f32.mxu1 %vm211_vm1, %v2495_v42 }
0x15bd   :  { %3681 = vmatmul.mubr.msk.f32.vlgmr.msra.gmra.mxu1 %vm211_vm1, %v3677_v12  ;;  %v2707_v46 = vpop.permute.xlu0 %2706 }
0x15be   :  { %3691 = vmatpush3.msra.mxu1 %v2709_v2  ;;  %3694 = vmatprep.mubr.msk.f32.mxu1 %vm301_vm2, %v2704_v43 }
0x15bf   :  { %3692 = vmatprep.subr.mxu1 %v2707_v46 }
0x15c0   :  { %3693 = vmatpush3.msra.mxu1 %v2707_v46 }
0x15c1   :  { %3697 = vmatprep.subr.mxu1 %v3308_v48 }
0x15c7   :  { %v3833_v57 = vpop.eup %3832 }
0x15c8   :  { %v2705_v47 = vmul.f32 %v3833_v57, %v3829_v32  ;;  %v2907_v32 = vrot.slane %v4352_v14, %v1388_v39  ;;  %v3350_v39 = vld [vmem:[%s4577_s6 + $0x58] sm:$0xff]  ;;  %v3349_v57 = vld [vmem:[%s4577_s6 + $0x50] sm:$0xff] }
0x15ca   :  { %3695 = vmatmul.mubr.msk.f32.vlgmr.msra.gmra.mxu1 %vm301_vm2, %v2705_v47  ;;  %v3347_v47 = vld [vmem:[%s4577_s6 + $0x40] sm:$0xff] }
0x15cb   :  { %3698 = vmatpush3.msra.mxu1 %v3308_v48  ;;  %v2930_v48 = vrot.slane %v4352_v14, %v1410_v56 }
0x15cc   :  { %3713 = vmatprep.subr.mxu1 %v3354_v19 }
0x167d   :  { %v3682_v50 = vpop.f32.mrf.mxu1 }
0x167e   :  { %v2586_v54 = vadd.f32 %v3682_v50, %v2295_v49 }
0x167f   :  { %v2576_v9 = vpop.f32.mrf.mxu1 }
0x1680   :  { %v2585_v21 = vadd.f32 %v2576_v9, %v2290_v53 }
0x168a   :  { %v3696_v24 = vpop.f32.mrf.mxu1 }
0x168c   :  { %v2784_v26 = vpop.f32.mrf.mxu1 }
0x168d   :  { %3699 = vmatprep.mubr.msk.f32.mxu1 %vm211_vm1, %v2784_v26 }
0x168e   :  { %3700 = vmatmul.mubr.msk.f32.vlgmr.msra.gmra.mxu1 %vm211_vm1, %v3696_v24  ;;  %v3026_v24 = vrot.slane %v4352_v14, %v1505_v1 }
0x168f   :  { %3714 = vmatpush3.msra.mxu1 %v3354_v19  ;;  %v3133_v19 = vrot.slane %v4352_v14, %v1613_v37  ;;  %v3357_v37 = vld [vmem:[%s4580_s9] ss:$0 sm:$0xff] }
0x1690   :  { %3715 = vmatprep.subr.mxu1 %v3353_v20 }
0x1691   :  { %3716 = vmatpush3.msra.mxu1 %v3353_v20 }
0x1692   :  { %3717 = vmatprep.subr.mxu1 %v3352_v22 }
0x1693   :  { %3718 = vmatpush3.msra.mxu1 %v3352_v22 }
0x1694   :  { %3719 = vmatprep.subr.mxu1 %v3351_v23 }
0x1695   :  { %3720 = vmatpush3.msra.mxu1 %v3351_v23 }
0x1696   :  { %3721 = vmatprep.subr.mxu1 %v3350_v39 }
0x1697   :  { %3722 = vmatpush3.msra.mxu1 %v3350_v39 }
0x1698   :  { %3723 = vmatprep.subr.mxu1 %v3349_v57 }
0x1699   :  { %3724 = vmatpush3.msra.mxu1 %v3349_v57 }
0x169a   :  { %3725 = vmatprep.subr.mxu1 %v3348_v41 }
0x169b   :  { %3726 = vmatpush3.msra.mxu1 %v3348_v41 }
0x169c   :  { %3727 = vmatprep.subr.mxu1 %v3347_v47 }
0x169d   :  { %3728 = vmatpush3.msra.mxu1 %v3347_v47 }
0x174e   :  { %v3701_v58 = vpop.f32.mrf.mxu1 }
0x174f   :  { %v2875_v8 = vadd.f32 %v3701_v58, %v2586_v54 }
0x1750   :  { %v2865_v59 = vpop.f32.mrf.mxu1 }
0x1751   :  { %v2881_v25 = vadd.f32 %v2879_v29, %v2875_v8  ;;  %v2874_v60 = vadd.f32 %v2865_v59, %v2585_v21 }
0x1753   :  { %v2880_v62 = vadd.f32 %v2879_v29, %v2874_v60  ;;  %v2883_v27 = vadd.f32 %v2881_v25, %v4346_v52 }
0x1755   :  { %v2887_v63 = vsel %vm119_vm0, %v2883_v27, 0.0  ;;  %v2882_v0 = vadd.f32 %v2880_v62, %v4344_v51  ;;  %v3344_v51 = vld [vmem:[%s4576_s5 + $0x38] sm:$0xff] }
0x1756   :  { %2888 = vadd.xlane.f32.xlu0 %v2887_v63  ;;  %3702 = vmatprep.subr.mxu0 %v3344_v51 }
0x1757   :  { %v2884_v45 = vsel %vm119_vm0, %v2882_v0, 0.0  ;;  %3703 = vmatpush3.msra.mxu0 %v3344_v51 }
0x1758   :  { %2885 = vadd.xlane.f32.xlu1 %v2884_v45  ;;  %3704 = vmatprep.subr.mxu0 %v3343_v16 }
0x1759   :  { %3705 = vmatpush3.msra.mxu0 %v3343_v16 }
0x175a   :  { %3706 = vmatprep.subr.mxu0 %v3342_v17 }
0x175b   :  { %3707 = vmatpush3.msra.mxu0 %v3342_v17 }
0x175c   :  { %3708 = vmatprep.subr.mxu0 %v3341_v18 }
0x175d   :  { %3709 = vmatpush3.msra.mxu0 %v3341_v18 }
0x17df   :  { %v2889_v3 = vpop.xlane.xlu0 %2888 }
0x17e0   :  { %v2891_v44 = vmul.f32 0.03125, %v2889_v3 }
0x17e1   :  { %v2886_v4 = vpop.xlane.xlu1 %2885 }
0x17e2   :  { %v2893_v61 = vsub.f32 %v2883_v27, %v2891_v44  ;;  %v2890_v6 = vmul.f32 0.03125, %v2886_v4 }
0x17e4   :  { %v2892_v10 = vsub.f32 %v2882_v0, %v2890_v6  ;;  %v2895_v11 = vmul.f32 %v2893_v61, %v2893_v61  ;;  %v2909_v34 = vmul.f32 %v2907_v32, %v2893_v61  ;;  %v3151_v6 = vld [vmem:[#allocation10 + $0x18] sm:$0xff] }
0x17e5   :  { %3732 = vmatprep.subr.mxu0 %v3151_v6 }
0x17e6   :  { %v2899_v13 = vsel %vm119_vm0, %v2895_v11, 0.0  ;;  %v2894_v15 = vmul.f32 %v2892_v10, %v2892_v10  ;;  %v2908_v35 = vmul.f32 %v2907_v32, %v2892_v10  ;;  %v3150_v10 = vld [vmem:[#allocation10 + $0x10] sm:$0xff]  ;;  %v3149_v11 = vld [vmem:[#allocation10 + $0x8] sm:$0xff] }
0x17e7   :  { %2900 = vadd.xlane.f32.xlu0 %v2899_v13  ;;  %v3148_v13 = vld [vmem:[#allocation10] sm:$0xff] }
0x17e8   :  { %v2896_v52 = vsel %vm119_vm0, %v2894_v15, 0.0 }
0x17e9   :  { %2897 = vadd.xlane.f32.xlu1 %v2896_v52 }
0x1870   :  { %v2901_v5 = vpop.xlane.xlu0 %2900 }
0x1871   :  { %v2903_v55 = vmul.f32 0.03125, %v2901_v5 }
0x1872   :  { %v2898_v2 = vpop.xlane.xlu1 %2897 }
0x1873   :  { %v2911_v28 = vadd.f32 1e-12, %v2903_v55  ;;  %v2902_v30 = vmul.f32 0.03125, %v2898_v2  ;;  %v3145_v2 = vrot.slane %v4352_v14, %v1625_v40 }
0x1875   :  { %3834 = vrsqrt.f32 %v2911_v28  ;;  %v2910_v31 = vadd.f32 1e-12, %v2902_v30 }
0x1877   :  { %3836 = vrsqrt.f32 %v2910_v31 }
0x1882   :  { %v3835_v33 = vpop.eup %3834 }
0x1883   :  { %v2915_v12 = vmul.f32 %v3835_v33, %v2909_v34 }
0x1884   :  { %v3837_v36 = vpop.eup %3836 }
0x1885   :  { %v2914_v42 = vmul.f32 %v3837_v36, %v2908_v35  ;;  %v2921_v46 = vadd.f32 %v2919_v38, %v2915_v12 }
0x1887   :  { %v2920_v43 = vadd.f32 %v2919_v38, %v2914_v42 }
0x1889   :  { %3710 = vmatprep.mubr.msk.f32.mxu0 %vm119_vm0, %v2920_v43 }
0x188a   :  { %3711 = vmatmul.mubr.msk.f32.vlgmr.msra.gmra.mxu0 %vm119_vm0, %v2921_v46 }
0x188b   :  { %3733 = vmatpush3.msra.mxu0 %v3151_v6 }
0x188c   :  { %3734 = vmatprep.subr.mxu0 %v3150_v10 }
0x188d   :  { %3735 = vmatpush3.msra.mxu0 %v3150_v10 }
0x188e   :  { %3736 = vmatprep.subr.mxu0 %v3149_v11 }
0x188f   :  { %3737 = vmatpush3.msra.mxu0 %v3149_v11 }
0x1890   :  { %3738 = vmatprep.subr.mxu0 %v3148_v13 }
0x1891   :  { %3739 = vmatpush3.msra.mxu0 %v3148_v13 }
0x194a   :  { %v3712_v49 = vpop.f32.mrf.mxu0 }
0x194b   :  { %v3009_v50 = vadd.f32 %v3712_v49, %v2930_v48 }
0x194c   :  { %v3003_v53 = vpop.f32.mrf.mxu0 }
0x194d   :  { %v3004_v54 = vadd.f32 %v3003_v53, %v2930_v48  ;;  %v3013_v21 = vmax.f32 %v3009_v50, 0.0 }
0x194f   :  { %v3012_v9 = vmax.f32 %v3004_v54, 0.0 }
0x1951   :  { %3729 = vmatprep.mubr.msk.f32.mxu1 %vm1507_vm3, %v3012_v9 }
0x1952   :  { %3730 = vmatmul.mubr.msk.f32.vlgmr.msra.gmra.mxu1 %vm1507_vm3, %v3013_v21 }
0x1a12   :  { %v3731_v26 = vpop.f32.mrf.mxu1 }
0x1a13   :  { %v3105_v29 = vadd.f32 %v3731_v26, %v3026_v24 }
0x1a14   :  { %v3099_v58 = vpop.f32.mrf.mxu1 }
0x1a15   :  { %v3100_v8 = vadd.f32 %v3099_v58, %v3026_v24  ;;  %v3109_v59 = vadd.f32 %v3105_v29, %v2921_v46 }
0x1a17   :  { %v3113_v56 = vsel %vm119_vm0, %v3109_v59, 0.0  ;;  %v3108_v25 = vadd.f32 %v3100_v8, %v2920_v43 }
0x1a18   :  { %3114 = vadd.xlane.f32.xlu0 %v3113_v56 }
0x1a19   :  { %v3110_v60 = vsel %vm119_vm0, %v3108_v25, 0.0 }
0x1a1a   :  { %3111 = vadd.xlane.f32.xlu1 %v3110_v60 }
0x1aa1   :  { %v3115_v62 = vpop.xlane.xlu0 %3114 }
0x1aa2   :  { %v3117_v27 = vmul.f32 0.03125, %v3115_v62 }
0x1aa3   :  { %v3112_v63 = vpop.xlane.xlu1 %3111 }
0x1aa4   :  { %v3119_v0 = vsub.f32 %v3109_v59, %v3117_v27  ;;  %v3116_v45 = vmul.f32 0.03125, %v3112_v63 }
0x1aa6   :  { %v3118_v3 = vsub.f32 %v3108_v25, %v3116_v45  ;;  %v3121_v44 = vmul.f32 %v3119_v0, %v3119_v0  ;;  %v3135_v22 = vmul.f32 %v3133_v19, %v3119_v0 }
0x1aa8   :  { %v3125_v1 = vsel %vm119_vm0, %v3121_v44, 0.0  ;;  %v3120_v4 = vmul.f32 %v3118_v3, %v3118_v3  ;;  %v3134_v23 = vmul.f32 %v3133_v19, %v3118_v3 }
0x1aa9   :  { %3126 = vadd.xlane.f32.xlu0 %v3125_v1 }
0x1aaa   :  { %v3122_v61 = vsel %vm119_vm0, %v3120_v4, 0.0 }
0x1aab   :  { %3123 = vadd.xlane.f32.xlu1 %v3122_v61 }
0x1b32   :  { %v3127_v15 = vpop.xlane.xlu0 %3126 }
0x1b33   :  { %v3129_v52 = vmul.f32 0.03125, %v3127_v15 }
0x1b34   :  { %v3124_v51 = vpop.xlane.xlu1 %3123 }
0x1b35   :  { %v3137_v16 = vadd.f32 1e-12, %v3129_v52  ;;  %v3128_v17 = vmul.f32 0.03125, %v3124_v51 }
0x1b37   :  { %3838 = vrsqrt.f32 %v3137_v16  ;;  %v3136_v18 = vadd.f32 1e-12, %v3128_v17 }
0x1b39   :  { %3840 = vrsqrt.f32 %v3136_v18 }
0x1b44   :  { %v3839_v20 = vpop.eup %3838 }
0x1b45   :  { %v3141_v55 = vmul.f32 %v3839_v20, %v3135_v22 }
0x1b46   :  { %v3841_v5 = vpop.eup %3840 }
0x1b47   :  { %v3140_v28 = vmul.f32 %v3841_v5, %v3134_v23  ;;  %v3147_v31 = vadd.f32 %v3145_v2, %v3141_v55 }
0x1b49   :  { %v3146_v30 = vadd.f32 %v3145_v2, %v3140_v28 }
0x1b4b   :  { %3740 = vmatprep.mubr.msk.f32.mxu0 %vm119_vm0, %v3146_v30 }
0x1b4c   :  { %3741 = vmatmul.mubr.msk.f32.vlgmr.msra.gmra.mxu0 %vm119_vm0, %v3147_v31 }
0x1c0c   :  { %v3742_v32 = vpop.f32.mrf.mxu0 }
0x1c0d   :  { %v3237_v33 = vadd.f32 %v3742_v32, %v3357_v37 }
0x1c0e   :  { %v3231_v34 = vpop.f32.mrf.mxu0 }
0x1c0f   :  { %3241 = vst [vmem:[#allocation11 + $0x8] sm:$0xff] %v3237_v33  ;;  %v3232_v7 = vadd.f32 %v3357_v37, %v3231_v34 }
0x1c11   :  { %3240 = vst [vmem:[#allocation11] sm:$0xff] %v3232_v7 }
0x1c12   :  { %3957 = shalt.err (!%p3954_p1)
}
0x1c13   :  { %3253 = dma.vmem_to_hbm [thread:$0]  %s3248_s4, 256, %s4581_s10, [#allocation4], %s3976_s18, %s3976_s18, %s3977_s19  }
0x1c14   :  { %3972 = dma.done.wait [#allocation4], 256  }
0x1c15   :  { %3973 = vsyncadd [#allocation4], 4294967040 }
0x1c16   :  { %3257 = vsyncpa [#allocation3], 1 }
0x1c17   :  { %3258 = vsyncpa [#allocation6], 1 }
0x1c18   :  { %3259 = vsyncpa [#allocation9], 1 }
0x1c19   :  { %3260 = vsyncpa [#allocation4], 1 }

</bundles_post_ra>
